<compile_context>
chip_gen: v5e
topology: v5e:2x2
jax: 0.10.0
libtpu: 0.0.40
codegen_flags: <defaults>
</compile_context>

<pallas_src>
import functools
import numpy as np
import jax
import jax.numpy as jnp
from jax.experimental import pallas as pl
from jax.experimental.pallas import tpu as pltpu


def _linear_upsample_matrix(s_in: int) -> np.ndarray:
    """(2*s_in, s_in) 1-D linear interpolation matrix, scale 2, align_corners=False
    (PyTorch area_pixel_compute_source_index semantics, incl. the src<0 clamp)."""
    s_out = 2 * s_in
    U = np.zeros((s_out, s_in), dtype=np.float64)
    for o in range(s_out):
        src = (o + 0.5) * 0.5 - 0.5
        if src < 0.0:
            src = 0.0
        i0 = min(int(np.floor(src)), s_in - 1)
        i1 = min(i0 + 1, s_in - 1)
        w1 = src - i0
        U[o, i0] += 1.0 - w1
        U[o, i1] += w1
    return U


def _upmerge_kernel(x_ref, wupw_ref, udh_ref, wband_ref, bias_ref, avg_ref,
                    gamma_ref, beta_ref, out_ref, pad_ref, *, C_in, C_out, D2, eps):
    Dp = D2 + 2                 # padded spatial extent
    WC = Dp * C_in              # padded (w, c_in)  lane width
    OC = D2 * C_out             # output (w, c_out) lane width

    # ---- separable trilinear x2 upsample (zero padding folded into the operators) -----
    # x: (S*S, S*C_in); w-axis upsample+pad -> (S*S, Dp*C_in); d/h-axes -> (Dp*Dp, Dp*C_in)
    tmp = jnp.dot(x_ref[0], wupw_ref[...], preferred_element_type=jnp.float32)
    up = jnp.dot(udh_ref[...], tmp, preferred_element_type=jnp.float32)
    pad_ref[...] = up.reshape(Dp, Dp, WC)          # halo rows/cols are exactly zero already

    # ---- Conv3d 3x3x3 as 9 banded matmuls: kw and C_in folded into the K dimension -----
    acc = jnp.zeros((D2 * D2, OC), jnp.float32)
    for kd in range(3):
        for kh in range(3):
            slab = pad_ref[kd:kd + D2, kh:kh + D2, :].reshape(D2 * D2, WC)
            acc = acc + jnp.dot(slab, wband_ref[kd * 3 + kh],
                                preferred_element_type=jnp.float32)
    acc = acc + bias_ref[...]                      # conv bias tiled over w (1, OC)

    # ---- LayerNorm over C_out, kept lane-dense via block-diagonal averaging matmul -----
    mu = jnp.dot(acc, avg_ref[...], preferred_element_type=jnp.float32)
    d = acc - mu
    var = jnp.dot(d * d, avg_ref[...], preferred_element_type=jnp.float32)
    y = d * jax.lax.rsqrt(var + eps) * gamma_ref[...] + beta_ref[...]
    out_ref[0] = y.astype(out_ref.dtype)


def upmerge_block_pallas(x, conv_w, conv_b, ln_w, ln_b, *, eps=1e-5):
    B, N, C_in = x.shape
    S = int(N ** (1.0 / 3.0)) + 1            # same formula as the PyTorch module
    assert S ** 3 == N, "token count must be a perfect cube for this module"
    D2 = 2 * S
    Dp = D2 + 2
    P = D2 ** 3
    C_out = conv_w.shape[0]
    WC = Dp * C_in
    OC = D2 * C_out

    # ---- host-side constant operators (shape-only, no weight data) ----------------------
    U = _linear_upsample_matrix(S)                                   # (D2, S)
    U_pad = np.zeros((Dp, S), np.float64)
    U_pad[1:-1] = U                                                  # zero halo rows = conv padding
    wup_w = np.kron(U_pad, np.eye(C_in)).T.astype(np.float32)        # (S*C_in, Dp*C_in)
    u_dh = np.kron(U_pad, U_pad).astype(np.float32)                  # (Dp*Dp, S*S)

    # tap-selection tensor: T[kw, wp, w] = 1 iff wp == w + kw  (for the banded conv weights)
    T = np.zeros((3, Dp, D2), np.float32)
    for kw in range(3):
        for w in range(D2):
            T[kw, w + kw, w] = 1.0

    # block-diagonal averaging matrix for LayerNorm in the (w, c_out) lane layout
    avg = np.kron(np.eye(D2), np.full((C_out, C_out), 1.0 / C_out)).astype(np.float32)  # (OC, OC)

    # ---- device-side weight reshapes (jit-friendly) --------------------------------------
    wn = conv_w.astype(jnp.float32)                                  # (C_out, C_in, 3, 3, 3)
    # wband[(kd,kh), wp*C_in+ci, w*C_out+co] = conv_w[co, ci, kd, kh, wp - w] (0 <= wp-w <= 2)
    wband = jnp.einsum('kpw,oiabk->abpiwo', jnp.asarray(T), wn).reshape(9, WC, OC)
    bias_t = jnp.tile(conv_b.astype(jnp.float32), D2).reshape(1, OC)
    gamma_t = jnp.tile(ln_w.astype(jnp.float32), D2).reshape(1, OC)
    beta_t = jnp.tile(ln_b.astype(jnp.float32), D2).reshape(1, OC)

    x2 = x.astype(jnp.float32).reshape(B, S * S, S * C_in)

    kernel = functools.partial(_upmerge_kernel, C_in=C_in, C_out=C_out, D2=D2, eps=eps)

    out = pl.pallas_call(
        kernel,
        out_shape=jax.ShapeDtypeStruct((B, D2 * D2, OC), jnp.float32),
        grid_spec=pltpu.PrefetchScalarGridSpec(
            num_scalar_prefetch=0,
            grid=(B,),
            in_specs=[
                pl.BlockSpec((1, S * S, S * C_in), lambda b: (b, 0, 0)),   # x (reshaped)
                pl.BlockSpec((S * C_in, WC), lambda b: (0, 0)),            # w-axis upsample+pad op
                pl.BlockSpec((Dp * Dp, S * S), lambda b: (0, 0)),          # d/h-axes upsample+pad op
                pl.BlockSpec((9, WC, OC), lambda b: (0, 0, 0)),            # banded conv weights
                pl.BlockSpec((1, OC), lambda b: (0, 0)),                   # conv bias (tiled over w)
                pl.BlockSpec((OC, OC), lambda b: (0, 0)),                  # LN averaging matrix
                pl.BlockSpec((1, OC), lambda b: (0, 0)),                   # LN gamma (tiled)
                pl.BlockSpec((1, OC), lambda b: (0, 0)),                   # LN beta  (tiled)
            ],
            out_specs=pl.BlockSpec((1, D2 * D2, OC), lambda b: (b, 0, 0)),
            scratch_shapes=[pltpu.VMEM((Dp, Dp, WC), jnp.float32)],
        ),
        compiler_params=pltpu.CompilerParams(dimension_semantics=("parallel",)),
    )(x2, jnp.asarray(wup_w), jnp.asarray(u_dh), wband, bias_t,
      jnp.asarray(avg), gamma_t, beta_t)

    # (B, D2*D2, D2*C_out) -> (B, 8N, C_out): same linear element order, pure metadata reshape.
    return out.reshape(B, P, C_out)


# ------------------------- float64 numpy reference (for checking) ------------------------

def upmerge_block_ref(x, conv_w, conv_b, ln_w, ln_b, eps=1e-5):
    xn = np.asarray(x, np.float64)
    wn = np.asarray(conv_w, np.float64)
    bn = np.asarray(conv_b, np.float64)
    gn = np.asarray(ln_w, np.float64)
    btn = np.asarray(ln_b, np.float64)
    B, N, C_in = xn.shape
    S = int(N ** (1.0 / 3.0)) + 1
    D2 = 2 * S
    C_out = wn.shape[0]

    U = _linear_upsample_matrix(S)
    x5 = xn.transpose(0, 2, 1).reshape(B, C_in, S, S, S)
    up = np.einsum('bcdhw,Dd,Hh,Ww->bcDHW', x5, U, U, U)

    pad = np.zeros((B, C_in, D2 + 2, D2 + 2, D2 + 2))
    pad[:, :, 1:-1, 1:-1, 1:-1] = up
    conv = np.zeros((B, C_out, D2, D2, D2)) + bn[None, :, None, None, None]
    for kd in range(3):
        for kh in range(3):
            for kw in range(3):
                slab = pad[:, :, kd:kd + D2, kh:kh + D2, kw:kw + D2]
                conv += np.einsum('bidhw,oi->bodhw', slab, wn[:, :, kd, kh, kw])

    z = conv.reshape(B, C_out, -1).transpose(0, 2, 1)               # (B, 8N, C_out)
    mu = z.mean(-1, keepdims=True)
    var = ((z - mu) ** 2).mean(-1, keepdims=True)
    return (z - mu) / np.sqrt(var + eps) * gn + btn


# ------------------------------------------ main -----------------------------------------

if __name__ == "__main__":
    B, C_in, C_out, S = 2, 8, 16, 4          # dim=8, dim_out=16, tokens = 4^3 = 64
    N = S ** 3

    key = jax.random.PRNGKey(0)
    k1, k2, k3, k4, k5 = jax.random.split(key, 5)
    x = jax.random.normal(k1, (B, N, C_in), dtype=jnp.float32)
    conv_w = 0.1 * jax.random.normal(k2, (C_out, C_in, 3, 3, 3), dtype=jnp.float32)
    conv_b = 0.1 * jax.random.normal(k3, (C_out,), dtype=jnp.float32)
    ln_w = 1.0 + 0.1 * jax.random.normal(k4, (C_out,), dtype=jnp.float32)
    ln_b = 0.1 * jax.random.normal(k5, (C_out,), dtype=jnp.float32)

    out = jax.block_until_ready(upmerge_block_pallas(x, conv_w, conv_b, ln_w, ln_b))

    ref = upmerge_block_ref(x, conv_w, conv_b, ln_w, ln_b)
    assert out.shape == (B, 8 * N, C_out) and out.dtype == jnp.float32
    err = float(np.max(np.abs(np.asarray(out, np.float64) - ref)))
    assert err < 1e-3, f"max abs err = {err}"
    print("KERNEL_OK")
</pallas_src>

<mosaic_0001>
module attributes {stable_mosaic.version = 11 : i64} {
  func.func @_upmerge_kernel(%arg0: i32, %arg1: memref<1x16x32xf32, #tpu.memory_space<vmem>>, %arg2: memref<32x80xf32, #tpu.memory_space<vmem>>, %arg3: memref<100x16xf32, #tpu.memory_space<vmem>>, %arg4: memref<9x80x128xf32, #tpu.memory_space<vmem>>, %arg5: memref<1x128xf32, #tpu.memory_space<vmem>>, %arg6: memref<128x128xf32, #tpu.memory_space<vmem>>, %arg7: memref<1x128xf32, #tpu.memory_space<vmem>>, %arg8: memref<1x128xf32, #tpu.memory_space<vmem>>, %arg9: memref<1x64x128xf32, #tpu.memory_space<vmem>>, %arg10: memref<10x10x80xf32, #tpu.memory_space<vmem>>) attributes {dimension_semantics = [#tpu.dimension_semantics<parallel>], iteration_bounds = array<i64: 2>, scalar_prefetch = 0 : i64, scratch_operands = 1 : i64, tpu.core_type = #tpu.core_type<tc>, window_params = [{transform_indices = @transform_0, window_bounds = array<i64: 1, 16, 32>}, {pipeline_mode = #tpu.pipeline_mode<synchronous>, transform_indices = @transform_1, window_bounds = array<i64: 32, 80>}, {pipeline_mode = #tpu.pipeline_mode<synchronous>, transform_indices = @transform_2, window_bounds = array<i64: 100, 16>}, {pipeline_mode = #tpu.pipeline_mode<synchronous>, transform_indices = @transform_3, window_bounds = array<i64: 9, 80, 128>}, {pipeline_mode = #tpu.pipeline_mode<synchronous>, transform_indices = @transform_4, window_bounds = array<i64: 1, 128>}, {pipeline_mode = #tpu.pipeline_mode<synchronous>, transform_indices = @transform_5, window_bounds = array<i64: 128, 128>}, {pipeline_mode = #tpu.pipeline_mode<synchronous>, transform_indices = @transform_6, window_bounds = array<i64: 1, 128>}, {pipeline_mode = #tpu.pipeline_mode<synchronous>, transform_indices = @transform_7, window_bounds = array<i64: 1, 128>}, {transform_indices = @transform_8, window_bounds = array<i64: 1, 64, 128>}]} {
    %c0 = arith.constant 0 : index
    %c0_0 = arith.constant 0 : index
    %c0_1 = arith.constant 0 : index
    %0 = vector.load %arg1[%c0, %c0_0, %c0_1] : memref<1x16x32xf32, #tpu.memory_space<vmem>>, vector<1x16x32xf32>
    %1 = vector.shape_cast %0 : vector<1x16x32xf32> to vector<16x32xf32>
    %c0_2 = arith.constant 0 : index
    %c0_3 = arith.constant 0 : index
    %2 = vector.load %arg2[%c0_2, %c0_3] : memref<32x80xf32, #tpu.memory_space<vmem>>, vector<32x80xf32>
    %cst = arith.constant dense<0.000000e+00> : vector<16x80xf32>
    %3 = tpu.matmul %1, %2, %cst {dimension_numbers = #tpu.dot_dimension_numbers<[1], [0], [0], [1], [0, 0, 1, 1], [], []>} : vector<16x32xf32>, vector<32x80xf32>, vector<16x80xf32> -> vector<16x80xf32>
    %c0_4 = arith.constant 0 : index
    %c0_5 = arith.constant 0 : index
    %4 = vector.load %arg3[%c0_4, %c0_5] : memref<100x16xf32, #tpu.memory_space<vmem>>, vector<100x16xf32>
    %cst_6 = arith.constant dense<0.000000e+00> : vector<100x80xf32>
    %5 = tpu.matmul %4, %3, %cst_6 {dimension_numbers = #tpu.dot_dimension_numbers<[1], [0], [0], [1], [0, 0, 1, 1], [], []>} : vector<100x16xf32>, vector<16x80xf32>, vector<100x80xf32> -> vector<100x80xf32>
    %6 = vector.shape_cast %5 : vector<100x80xf32> to vector<10x10x80xf32>
    %c0_7 = arith.constant 0 : index
    %c0_8 = arith.constant 0 : index
    %c0_9 = arith.constant 0 : index
    %7 = vector.load %arg10[%c0_7, %c0_8, %c0_9] : memref<10x10x80xf32, #tpu.memory_space<vmem>>, vector<10x10x80xf32>
    tpu.vector_store %arg10[%c0_7, %c0_8, %c0_9], %6 {strides = array<i32>} : memref<10x10x80xf32, #tpu.memory_space<vmem>>, vector<10x10x80xf32>,
    %cst_10 = arith.constant 0.000000e+00 : f32
    %8 = vector.broadcast %cst_10 : f32 to vector<64x128xf32>
    %c0_11 = arith.constant 0 : index
    %c0_12 = arith.constant 0 : index
    %c0_13 = arith.constant 0 : index
    %9 = vector.load %arg10[%c0_11, %c0_12, %c0_13] : memref<10x10x80xf32, #tpu.memory_space<vmem>>, vector<8x8x80xf32>
    %10 = vector.shape_cast %9 : vector<8x8x80xf32> to vector<64x80xf32>
    %c0_14 = arith.constant 0 : index
    %c0_15 = arith.constant 0 : index
    %c0_16 = arith.constant 0 : index
    %11 = vector.load %arg4[%c0_14, %c0_15, %c0_16] : memref<9x80x128xf32, #tpu.memory_space<vmem>>, vector<1x80x128xf32>
    %12 = vector.shape_cast %11 : vector<1x80x128xf32> to vector<80x128xf32>
    %cst_17 = arith.constant dense<0.000000e+00> : vector<64x128xf32>
    %13 = tpu.matmul %10, %12, %cst_17 {dimension_numbers = #tpu.dot_dimension_numbers<[1], [0], [0], [1], [0, 0, 1, 1], [], []>} : vector<64x80xf32>, vector<80x128xf32>, vector<64x128xf32> -> vector<64x128xf32>
    %14 = arith.addf %8, %13 : vector<64x128xf32>
    %c0_18 = arith.constant 0 : index
    %c1 = arith.constant 1 : index
    %c0_19 = arith.constant 0 : index
    %15 = vector.load %arg10[%c0_18, %c1, %c0_19] : memref<10x10x80xf32, #tpu.memory_space<vmem>>, vector<8x8x80xf32>
    %16 = vector.shape_cast %15 : vector<8x8x80xf32> to vector<64x80xf32>
    %c1_20 = arith.constant 1 : index
    %c0_21 = arith.constant 0 : index
    %c0_22 = arith.constant 0 : index
    %17 = vector.load %arg4[%c1_20, %c0_21, %c0_22] : memref<9x80x128xf32, #tpu.memory_space<vmem>>, vector<1x80x128xf32>
    %18 = vector.shape_cast %17 : vector<1x80x128xf32> to vector<80x128xf32>
    %cst_23 = arith.constant dense<0.000000e+00> : vector<64x128xf32>
    %19 = tpu.matmul %16, %18, %cst_23 {dimension_numbers = #tpu.dot_dimension_numbers<[1], [0], [0], [1], [0, 0, 1, 1], [], []>} : vector<64x80xf32>, vector<80x128xf32>, vector<64x128xf32> -> vector<64x128xf32>
    %20 = arith.addf %14, %19 : vector<64x128xf32>
    %c0_24 = arith.constant 0 : index
    %c2 = arith.constant 2 : index
    %c0_25 = arith.constant 0 : index
    %21 = vector.load %arg10[%c0_24, %c2, %c0_25] : memref<10x10x80xf32, #tpu.memory_space<vmem>>, vector<8x8x80xf32>
    %22 = vector.shape_cast %21 : vector<8x8x80xf32> to vector<64x80xf32>
    %c2_26 = arith.constant 2 : index
    %c0_27 = arith.constant 0 : index
    %c0_28 = arith.constant 0 : index
    %23 = vector.load %arg4[%c2_26, %c0_27, %c0_28] : memref<9x80x128xf32, #tpu.memory_space<vmem>>, vector<1x80x128xf32>
    %24 = vector.shape_cast %23 : vector<1x80x128xf32> to vector<80x128xf32>
    %cst_29 = arith.constant dense<0.000000e+00> : vector<64x128xf32>
    %25 = tpu.matmul %22, %24, %cst_29 {dimension_numbers = #tpu.dot_dimension_numbers<[1], [0], [0], [1], [0, 0, 1, 1], [], []>} : vector<64x80xf32>, vector<80x128xf32>, vector<64x128xf32> -> vector<64x128xf32>
    %26 = arith.addf %20, %25 : vector<64x128xf32>
    %c1_30 = arith.constant 1 : index
    %c0_31 = arith.constant 0 : index
    %c0_32 = arith.constant 0 : index
    %27 = vector.load %arg10[%c1_30, %c0_31, %c0_32] : memref<10x10x80xf32, #tpu.memory_space<vmem>>, vector<8x8x80xf32>
    %28 = vector.shape_cast %27 : vector<8x8x80xf32> to vector<64x80xf32>
    %c3 = arith.constant 3 : index
    %c0_33 = arith.constant 0 : index
    %c0_34 = arith.constant 0 : index
    %29 = vector.load %arg4[%c3, %c0_33, %c0_34] : memref<9x80x128xf32, #tpu.memory_space<vmem>>, vector<1x80x128xf32>
    %30 = vector.shape_cast %29 : vector<1x80x128xf32> to vector<80x128xf32>
    %cst_35 = arith.constant dense<0.000000e+00> : vector<64x128xf32>
    %31 = tpu.matmul %28, %30, %cst_35 {dimension_numbers = #tpu.dot_dimension_numbers<[1], [0], [0], [1], [0, 0, 1, 1], [], []>} : vector<64x80xf32>, vector<80x128xf32>, vector<64x128xf32> -> vector<64x128xf32>
    %32 = arith.addf %26, %31 : vector<64x128xf32>
    %c1_36 = arith.constant 1 : index
    %c1_37 = arith.constant 1 : index
    %c0_38 = arith.constant 0 : index
    %33 = vector.load %arg10[%c1_36, %c1_37, %c0_38] : memref<10x10x80xf32, #tpu.memory_space<vmem>>, vector<8x8x80xf32>
    %34 = vector.shape_cast %33 : vector<8x8x80xf32> to vector<64x80xf32>
    %c4 = arith.constant 4 : index
    %c0_39 = arith.constant 0 : index
    %c0_40 = arith.constant 0 : index
    %35 = vector.load %arg4[%c4, %c0_39, %c0_40] : memref<9x80x128xf32, #tpu.memory_space<vmem>>, vector<1x80x128xf32>
    %36 = vector.shape_cast %35 : vector<1x80x128xf32> to vector<80x128xf32>
    %cst_41 = arith.constant dense<0.000000e+00> : vector<64x128xf32>
    %37 = tpu.matmul %34, %36, %cst_41 {dimension_numbers = #tpu.dot_dimension_numbers<[1], [0], [0], [1], [0, 0, 1, 1], [], []>} : vector<64x80xf32>, vector<80x128xf32>, vector<64x128xf32> -> vector<64x128xf32>
    %38 = arith.addf %32, %37 : vector<64x128xf32>
    %c1_42 = arith.constant 1 : index
    %c2_43 = arith.constant 2 : index
    %c0_44 = arith.constant 0 : index
    %39 = vector.load %arg10[%c1_42, %c2_43, %c0_44] : memref<10x10x80xf32, #tpu.memory_space<vmem>>, vector<8x8x80xf32>
    %40 = vector.shape_cast %39 : vector<8x8x80xf32> to vector<64x80xf32>
    %c5 = arith.constant 5 : index
    %c0_45 = arith.constant 0 : index
    %c0_46 = arith.constant 0 : index
    %41 = vector.load %arg4[%c5, %c0_45, %c0_46] : memref<9x80x128xf32, #tpu.memory_space<vmem>>, vector<1x80x128xf32>
    %42 = vector.shape_cast %41 : vector<1x80x128xf32> to vector<80x128xf32>
    %cst_47 = arith.constant dense<0.000000e+00> : vector<64x128xf32>
    %43 = tpu.matmul %40, %42, %cst_47 {dimension_numbers = #tpu.dot_dimension_numbers<[1], [0], [0], [1], [0, 0, 1, 1], [], []>} : vector<64x80xf32>, vector<80x128xf32>, vector<64x128xf32> -> vector<64x128xf32>
    %44 = arith.addf %38, %43 : vector<64x128xf32>
    %c2_48 = arith.constant 2 : index
    %c0_49 = arith.constant 0 : index
    %c0_50 = arith.constant 0 : index
    %45 = vector.load %arg10[%c2_48, %c0_49, %c0_50] : memref<10x10x80xf32, #tpu.memory_space<vmem>>, vector<8x8x80xf32>
    %46 = vector.shape_cast %45 : vector<8x8x80xf32> to vector<64x80xf32>
    %c6 = arith.constant 6 : index
    %c0_51 = arith.constant 0 : index
    %c0_52 = arith.constant 0 : index
    %47 = vector.load %arg4[%c6, %c0_51, %c0_52] : memref<9x80x128xf32, #tpu.memory_space<vmem>>, vector<1x80x128xf32>
    %48 = vector.shape_cast %47 : vector<1x80x128xf32> to vector<80x128xf32>
    %cst_53 = arith.constant dense<0.000000e+00> : vector<64x128xf32>
    %49 = tpu.matmul %46, %48, %cst_53 {dimension_numbers = #tpu.dot_dimension_numbers<[1], [0], [0], [1], [0, 0, 1, 1], [], []>} : vector<64x80xf32>, vector<80x128xf32>, vector<64x128xf32> -> vector<64x128xf32>
    %50 = arith.addf %44, %49 : vector<64x128xf32>
    %c2_54 = arith.constant 2 : index
    %c1_55 = arith.constant 1 : index
    %c0_56 = arith.constant 0 : index
    %51 = vector.load %arg10[%c2_54, %c1_55, %c0_56] : memref<10x10x80xf32, #tpu.memory_space<vmem>>, vector<8x8x80xf32>
    %52 = vector.shape_cast %51 : vector<8x8x80xf32> to vector<64x80xf32>
    %c7 = arith.constant 7 : index
    %c0_57 = arith.constant 0 : index
    %c0_58 = arith.constant 0 : index
    %53 = vector.load %arg4[%c7, %c0_57, %c0_58] : memref<9x80x128xf32, #tpu.memory_space<vmem>>, vector<1x80x128xf32>
    %54 = vector.shape_cast %53 : vector<1x80x128xf32> to vector<80x128xf32>
    %cst_59 = arith.constant dense<0.000000e+00> : vector<64x128xf32>
    %55 = tpu.matmul %52, %54, %cst_59 {dimension_numbers = #tpu.dot_dimension_numbers<[1], [0], [0], [1], [0, 0, 1, 1], [], []>} : vector<64x80xf32>, vector<80x128xf32>, vector<64x128xf32> -> vector<64x128xf32>
    %56 = arith.addf %50, %55 : vector<64x128xf32>
    %c2_60 = arith.constant 2 : index
    %c2_61 = arith.constant 2 : index
    %c0_62 = arith.constant 0 : index
    %57 = vector.load %arg10[%c2_60, %c2_61, %c0_62] : memref<10x10x80xf32, #tpu.memory_space<vmem>>, vector<8x8x80xf32>
    %58 = vector.shape_cast %57 : vector<8x8x80xf32> to vector<64x80xf32>
    %c8 = arith.constant 8 : index
    %c0_63 = arith.constant 0 : index
    %c0_64 = arith.constant 0 : index
    %59 = vector.load %arg4[%c8, %c0_63, %c0_64] : memref<9x80x128xf32, #tpu.memory_space<vmem>>, vector<1x80x128xf32>
    %60 = vector.shape_cast %59 : vector<1x80x128xf32> to vector<80x128xf32>
    %cst_65 = arith.constant dense<0.000000e+00> : vector<64x128xf32>
    %61 = tpu.matmul %58, %60, %cst_65 {dimension_numbers = #tpu.dot_dimension_numbers<[1], [0], [0], [1], [0, 0, 1, 1], [], []>} : vector<64x80xf32>, vector<80x128xf32>, vector<64x128xf32> -> vector<64x128xf32>
    %62 = arith.addf %56, %61 : vector<64x128xf32>
    %c0_66 = arith.constant 0 : index
    %c0_67 = arith.constant 0 : index
    %63 = vector.load %arg5[%c0_66, %c0_67] : memref<1x128xf32, #tpu.memory_space<vmem>>, vector<1x128xf32>
    %64 = vector.broadcast %63 : vector<1x128xf32> to vector<64x128xf32>
    %65 = arith.addf %62, %64 : vector<64x128xf32>
    %c0_68 = arith.constant 0 : index
    %c0_69 = arith.constant 0 : index
    %66 = vector.load %arg6[%c0_68, %c0_69] : memref<128x128xf32, #tpu.memory_space<vmem>>, vector<128x128xf32>
    %cst_70 = arith.constant dense<0.000000e+00> : vector<64x128xf32>
    %67 = tpu.matmul %65, %66, %cst_70 {dimension_numbers = #tpu.dot_dimension_numbers<[1], [0], [0], [1], [0, 0, 1, 1], [], []>} : vector<64x128xf32>, vector<128x128xf32>, vector<64x128xf32> -> vector<64x128xf32>
    %68 = arith.subf %65, %67 : vector<64x128xf32>
    %69 = arith.mulf %68, %68 : vector<64x128xf32>
    %c0_71 = arith.constant 0 : index
    %c0_72 = arith.constant 0 : index
    %70 = vector.load %arg6[%c0_71, %c0_72] : memref<128x128xf32, #tpu.memory_space<vmem>>, vector<128x128xf32>
    %cst_73 = arith.constant dense<0.000000e+00> : vector<64x128xf32>
    %71 = tpu.matmul %69, %70, %cst_73 {dimension_numbers = #tpu.dot_dimension_numbers<[1], [0], [0], [1], [0, 0, 1, 1], [], []>} : vector<64x128xf32>, vector<128x128xf32>, vector<64x128xf32> -> vector<64x128xf32>
    %cst_74 = arith.constant 9.99999974E-6 : f32
    %72 = vector.broadcast %cst_74 : f32 to vector<64x128xf32>
    %73 = arith.addf %71, %72 : vector<64x128xf32>
    %74 = math.rsqrt %73 : vector<64x128xf32>
    %75 = arith.mulf %68, %74 : vector<64x128xf32>
    %c0_75 = arith.constant 0 : index
    %c0_76 = arith.constant 0 : index
    %76 = vector.load %arg7[%c0_75, %c0_76] : memref<1x128xf32, #tpu.memory_space<vmem>>, vector<1x128xf32>
    %77 = vector.broadcast %76 : vector<1x128xf32> to vector<64x128xf32>
    %78 = arith.mulf %75, %77 : vector<64x128xf32>
    %c0_77 = arith.constant 0 : index
    %c0_78 = arith.constant 0 : index
    %79 = vector.load %arg8[%c0_77, %c0_78] : memref<1x128xf32, #tpu.memory_space<vmem>>, vector<1x128xf32>
    %80 = vector.broadcast %79 : vector<1x128xf32> to vector<64x128xf32>
    %81 = arith.addf %78, %80 : vector<64x128xf32>
    %c0_79 = arith.constant 0 : index
    %c0_80 = arith.constant 0 : index
    %c0_81 = arith.constant 0 : index
    %82 = vector.load %arg9[%c0_79, %c0_80, %c0_81] : memref<1x64x128xf32, #tpu.memory_space<vmem>>, vector<1x64x128xf32>
    %83 = vector.shape_cast %82 : vector<1x64x128xf32> to vector<64x128xf32>
    %84 = vector.shape_cast %81 : vector<64x128xf32> to vector<1x64x128xf32>
    tpu.vector_store %arg9[%c0_79, %c0_80, %c0_81], %84 {strides = array<i32>} : memref<1x64x128xf32, #tpu.memory_space<vmem>>, vector<1x64x128xf32>,
    return
  }
  func.func @transform_0(%arg0: i32) -> (i32, i32, i32) {
    %c0_i32 = arith.constant 0 : i32
    %c0_i32_0 = arith.constant 0 : i32
    %c0_i32_1 = arith.constant 0 : i32
    return %arg0, %c0_i32, %c0_i32_0 : i32, i32, i32
  }
  func.func @transform_1(%arg0: i32) -> (i32, i32) {
    %c0_i32 = arith.constant 0 : i32
    %c0_i32_0 = arith.constant 0 : i32
    %c0_i32_1 = arith.constant 0 : i32
    return %c0_i32, %c0_i32_0 : i32, i32
  }
  func.func @transform_2(%arg0: i32) -> (i32, i32) {
    %c0_i32 = arith.constant 0 : i32
    %c0_i32_0 = arith.constant 0 : i32
    %c0_i32_1 = arith.constant 0 : i32
    return %c0_i32, %c0_i32_0 : i32, i32
  }
  func.func @transform_3(%arg0: i32) -> (i32, i32, i32) {
    %c0_i32 = arith.constant 0 : i32
    %c0_i32_0 = arith.constant 0 : i32
    %c0_i32_1 = arith.constant 0 : i32
    %c0_i32_2 = arith.constant 0 : i32
    return %c0_i32, %c0_i32_0, %c0_i32_1 : i32, i32, i32
  }
  func.func @transform_4(%arg0: i32) -> (i32, i32) {
    %c0_i32 = arith.constant 0 : i32
    %c0_i32_0 = arith.constant 0 : i32
    %c0_i32_1 = arith.constant 0 : i32
    return %c0_i32, %c0_i32_0 : i32, i32
  }
  func.func @transform_5(%arg0: i32) -> (i32, i32) {
    %c0_i32 = arith.constant 0 : i32
    %c0_i32_0 = arith.constant 0 : i32
    %c0_i32_1 = arith.constant 0 : i32
    return %c0_i32, %c0_i32_0 : i32, i32
  }
  func.func @transform_6(%arg0: i32) -> (i32, i32) {
    %c0_i32 = arith.constant 0 : i32
    %c0_i32_0 = arith.constant 0 : i32
    %c0_i32_1 = arith.constant 0 : i32
    return %c0_i32, %c0_i32_0 : i32, i32
  }
  func.func @transform_7(%arg0: i32) -> (i32, i32) {
    %c0_i32 = arith.constant 0 : i32
    %c0_i32_0 = arith.constant 0 : i32
    %c0_i32_1 = arith.constant 0 : i32
    return %c0_i32, %c0_i32_0 : i32, i32
  }
  func.func @transform_8(%arg0: i32) -> (i32, i32, i32) {
    %c0_i32 = arith.constant 0 : i32
    %c0_i32_0 = arith.constant 0 : i32
    %c0_i32_1 = arith.constant 0 : i32
    return %arg0, %c0_i32, %c0_i32_0 : i32, i32, i32
  }
}

</mosaic_0001>

<bundles_post_ra>
// kernel: tpu_custom_call.1
= control target key start
LH: loop header
LB: loop body
LE: loop exit
PB: predicated region body
PF: predicated region fallthrough
CT: control target
= control target key end

     0   :  { %13 = vsyncpa [#allocation4], 0  ;;  %s2716_s0 = inlined_call_operand.vmem [shape: f32[2,16,32], index: 0, kind: input, shape index: {}]   ;;  %s2717_s1 = inlined_call_operand.vmem [shape: f32[32,80], index: 1, kind: input, shape index: {}]   ;;  %s2718_s2 = inlined_call_operand.vmem [shape: f32[100,16], index: 2, kind: input, shape index: {}]   ;;  %s2719_s3 = inlined_call_operand.hbm [shape: f32[9,80,128], index: 3, kind: input, shape index: {}]   ;;  %s2720_s4 = inlined_call_operand.vmem [shape: f32[1,128], index: 4, kind: input, shape index: {}]   ;;  %s2721_s5 = inlined_call_operand.hbm [shape: f32[128,128], index: 5, kind: input, shape index: {}]   ;;  %s2722_s6 = inlined_call_operand.vmem [shape: f32[1,128], index: 6, kind: input, shape index: {}]   ;;  %s2723_s7 = inlined_call_operand.vmem [shape: f32[1,128], index: 7, kind: input, shape index: {}]   ;;  %s2724_s8 = inlined_call_operand.hbm [shape: f32[2,64,128], index: 8, kind: output, shape index: {}]  }
   0x1   :  { %14 = vsyncpa [#allocation7], 0 }
   0x2   :  { %15 = vsyncpa [#allocation5], 0 }
   0x3   :  { %17 = vsyncpa [#allocation5 + $0x1], 0  ;;  %s2181_s27 = smov 0   ;;  %s2183_s28 = smov 0  }
   0x4   :  { %s2185_s29 = smov 0   ;;  %s2187_s30 = smov 0  }
   0x5 LB: > { %s2202_s9 = sadd.s32 4294967295, %s2128_s30   ;;  %s1808_s10 = sadd.s32 4294967294, %s2128_s30   ;;  %s2128_s30 = sphi %s2187_s30, %s2731_s30   ;;  %s2124_s29 = sphi %s2185_s29, %s2730_s29   ;;  %s2120_s28 = sphi %s2183_s28, %s2729_s28   ;;  %s2116_s27 = sphi %s2181_s27, %s2728_s27  }
   0x6   : > { %s2206_s11 = sadd.s32 1, %s2128_s30   ;;  %s203_s12 = sadd.s32 1, %s2124_s29 }
   0x7   : > { %s200_s13 = ssub.s32 %s2128_s30, %s2206_s11  ;;  %p213_p0 = scmp.ne.s32.totalorder %s2124_s29, %s2120_s28 }
   0x8   : > { %p201_p1 = scmp.eq.s32.totalorder %s200_s13, 0  ;;  %p214_p2 = scmp.eq.s32.totalorder %s2202_s9, 1 }
   0x9   : > { %p219_p3 = scmp.ne.s32.totalorder %s2120_s28, %s2116_s27  ;;  %p220_p4 = scmp.eq.s32.totalorder %s1808_s10, 1 }
   0xa   : > { %s2217_s14 = scalar_select %p201_p1, %s2124_s29, %s203_s12  }
   0xb   : > { %p2219_p5 = por %p214_p2, %p213_p0  ;;  %p2223_p6 = por %p220_p4, %p219_p3 }
   0xc   : > { %p1809_p7 = scmp.ge.s32.totalorder %s2128_s30, 1  ;;  %p227_p8 = scmp.lt.s32.totalorder %s2128_s30, 3 }
   0xd   : > { %p1936_p9 = scmp.eq.s32.totalorder %s2202_s9, 0  ;;  %s244_s20 = sshll.u32 %s2719_s3, 4  ;;  %s245_s20 = int_to_ptr.hbm [resolvable:$true] %s244_s20 }
   0xe   : > { %p2230_p10 = pnand %p1809_p7, %p227_p8  ;;  %s2130_s21 = smov [#allocation3]  }
   0xf   : > { %s246_s22 = sshll.u32 %s2130_s21, 4  ;;  %s261_s25 = sshll.u32 %s2721_s5, 4  ;;  %s247_s22 = int_to_ptr.vmem [resolvable:$true] %s246_s22  ;;  %s262_s25 = int_to_ptr.hbm [resolvable:$true] %s261_s25 }
  0x10   : > { %p1925_p11 = pneg %p2230_p10  ;;  %s2131_s26 = smov 128  }
  0x11   : > { %s2132_s10 = smov 8   ;;  %s2133_s12 = smov [#allocation6]  }
  0x12   : > { %p1926_p12 = pnand %p1936_p9, %p1925_p11  ;;  %s263_s13 = sshll.u32 %s2133_s12, 4  ;;  %s264_s13 = int_to_ptr.vmem [resolvable:$true] %s263_s13 }
  0x13   : > { %293 = sbr.rel (%p2230_p10) target bundleno = 957 (0x3bd), region = 52 }
  0x14   : > { %1928 = dma.hbm_to_vmem [thread:$0]  (!%p1926_p12), %s245_s20, 11520, %s247_s22, [#allocation4], %s2131_s26, %s2131_s26, %s2132_s10  }
  0x15   : > { %1931 = dma.hbm_to_vmem [thread:$0]  (!%p1926_p12), %s262_s25, 2048, %s264_s13, [#allocation7], %s2131_s26, %s2131_s26, %s2132_s10  }
  0x18   : > { %2103 = dma.done.wait (%p1936_p9), [#allocation4], 11520  }
  0x19   : > { %2105 = vsyncadd (%p1936_p9), [#allocation4], 4294955776 }
  0x1a   : > { %2107 = dma.done.wait (%p1936_p9), [#allocation7], 2048  }
  0x1b   : > { %2109 = vsyncadd (%p1936_p9), [#allocation7], 4294965248  ;;  %p333_p13 = scmp.lt.s32.totalorder %s2202_s9, 1  ;;  %v343_v0 = vld [vmem:[%s2717_s1 + $0x18] sm:$0xff]  ;;  %v342_v1 = vld [vmem:[%s2717_s1 + $0x10] sm:$0xff]  ;;  %vm344_vm0 = vcmask 261120  }
  0x1c   : > { %363 = vmatpush.msra.mxu0 %v343_v0  ;;  %v341_v2 = vld [vmem:[%s2717_s1 + $0x8] sm:$0xff]  ;;  %v340_v3 = vld [vmem:[%s2717_s1] sm:$0xff]  ;;  %vm387_vm1 = vcmask 130048   ;;  %v376_v10 = vld [vmem:[%s2718_s2 + $0x10] sm:$0xff]  ;;  %vm627_vm2 = vcmask 654336   ;;  %vm629_vm3 = vcmask 648192  }
  0x1d   : > { %s334_s18 = scalar_select %p333_p13, %s2202_s9, 1  ;;  %v374_v8 = vld [vmem:[%s2718_s2] sm:$0xff]  ;;  %v375_v9 = vld [vmem:[%s2718_s2 + $0x8] sm:$0xff]  ;;  %v377_v11 = vld [vmem:[%s2718_s2 + $0x18] sm:$0xff] }
  0x1e   : > { %364 = vmatpush.msra.mxu0 %v342_v1  ;;  %v378_v12 = vld [vmem:[%s2718_s2 + $0x20] sm:$0xff]  ;;  %v379_v13 = vld [vmem:[%s2718_s2 + $0x28] sm:$0xff]  ;;  %v380_v14 = vld [vmem:[%s2718_s2 + $0x30] sm:$0xff]  ;;  %s1912_s26 = sshll.u32 %s2202_s9, 6  ;;  %s2078_s24 = scalar_lea.hbm %s2724_s8, 128 }
  0x1f   : > { %s1911_s19 = sshll.u32 %s334_s18, 4  ;;  %v381_v15 = vld [vmem:[%s2718_s2 + $0x38] sm:$0xff]  ;;  %v382_v16 = vld [vmem:[%s2718_s2 + $0x40] sm:$0xff]  ;;  %v383_v17 = vld [vmem:[%s2718_s2 + $0x48] sm:$0xff]  ;;  %s1720_s13 = scalar_lea.hbm %s2724_s8, %s1912_s26 }
  0x20   : > { %s337_s10 = scalar_lea.vmem %s2716_s0, %s1911_s19  ;;  %365 = vmatpush.msra.mxu0 %v341_v2  ;;  %v666_v18 = vld [vmem:[#allocation3 + $0x48] sm:$0xff]  ;;  %v385_v19 = vld [vmem:[%s2718_s2 + $0x58] sm:$0xff]  ;;  %v665_v20 = vld [vmem:[#allocation3 + $0x40] sm:$0xff]  ;;  %s330_s19 = sand.u32 1, %s2120_s28  }
  0x21   : > { %v338_v4 = vld [vmem:[%s337_s10] sm:$0xff]  ;;  %v339_v5 = vld [vmem:[%s337_s10 + $0x8] sm:$0xff]  ;;  %781 = vmatpush.msra.mxu3 %v666_v18  ;;  %v663_v23 = vld [vmem:[#allocation3 + $0x30] sm:$0xff]  ;;  %s1816_s22 = sshll.u32 %s330_s19, 6  ;;  %s1723_s9 = sshll.u32 %s1720_s13, 4  ;;  %s1724_s9 = int_to_ptr.hbm [resolvable:$true] %s1723_s9 }
  0x22   : > { %366 = vmatpush.msra.mxu0 %v340_v3  ;;  %v664_v21 = vld [vmem:[#allocation3 + $0x38] sm:$0xff]  ;;  %v834_v24 = vld [vmem:[#allocation3 + $0xe8] sm:$0xff]  ;;  %v684_v26 = vld [vmem:[#allocation3 + $0x90] sm:$0xff]  ;;  %s2651_s25 = scalar_lea.vmem [#allocation8], %s1816_s22  ;;  %s1709_s20 = scalar_lea.sflag [#allocation5], %s330_s19 }
  0x23   : > { %1819 = vmatmul.msk.f32.vlgmr.msra.gmra.mxu0 %vm344_vm0, %v338_v4  ;;  %782 = vmatpush.msra.mxu3 %v665_v20  ;;  %v685_v22 = vld [vmem:[#allocation3 + $0x98] sm:$0xff]  ;;  %v384_v25 = vld [vmem:[%s2718_s2 + $0x50] sm:$0xff]  ;;  %v833_v28 = vld [vmem:[#allocation3 + $0xe0] sm:$0xff]  ;;  %s1721_s18 = sshll.u32 %s2651_s25, 4  ;;  %s2072_s17 = sshra.s32 %s1724_s9, 4  ;;  %s1722_s18 = int_to_ptr.vmem [resolvable:$true] %s1721_s18  ;;  %s2073_s17 = int_to_ptr.hbm [resolvable:$true] %s2072_s17 }
  0x24   : > { %865 = vmatpush.msrb.mxu0 %v834_v24  ;;  %v662_v27 = vld [vmem:[#allocation3 + $0x28] sm:$0xff]  ;;  %v386_v29 = vld [vmem:[%s2718_s2 + $0x60] sm:$0xf]  ;;  %v661_v31 = vld [vmem:[#allocation3 + $0x20] sm:$0xff]  ;;  %s2074_s21 = scalar_lea.hbm %s2073_s17, 64  ;;  %p2079_p3 = scmp.lt.s32.totalorder %s2073_s17, %s2724_s8 }
  0x25   : > { %783 = vmatpush.msra.mxu3 %v664_v21  ;;  %v683_v30 = vld [vmem:[#allocation3 + $0x88] sm:$0xff]  ;;  %v832_v32 = vld [vmem:[#allocation3 + $0xd8] sm:$0xff]  ;;  %v682_v33 = vld [vmem:[#allocation3 + $0x80] sm:$0xff]  ;;  %p2075_p0 = scmp.ne.s32.totalorder %s2073_s17, %s2074_s21  ;;  %p2080_p4 = scmp.lt.s32.totalorder %s2078_s24, %s2074_s21 }
  0x26   : > { %866 = vmatpush.msrb.mxu0 %v833_v28  ;;  %v660_v34 = vld [vmem:[#allocation3 + $0x18] sm:$0xff]  ;;  %v831_v35 = vld [vmem:[#allocation3 + $0xd0] sm:$0xff]  ;;  %v830_v38 = vld [vmem:[#allocation3 + $0xc8] sm:$0xff] }
  0x27   : > { %784 = vmatpush.msra.mxu3 %v663_v23  ;;  %v681_v36 = vld [vmem:[#allocation3 + $0x78] sm:$0xff]  ;;  %v659_v37 = vld [vmem:[#allocation3 + $0x10] sm:$0xff]  ;;  %v658_v40 = vld [vmem:[#allocation3 + $0x8] sm:$0xff]  ;;  %p2076_p1 = pnand %p2075_p0, %p2219_p5  ;;  %p2081_p7 = por %p2080_p4, %p2079_p3 }
  0x28   : > { %867 = vmatpush.msrb.mxu0 %v832_v32  ;;  %v680_v39 = vld [vmem:[#allocation3 + $0x70] sm:$0xff]  ;;  %v829_v41 = vld [vmem:[#allocation3 + $0xc0] sm:$0xff]  ;;  %v679_v42 = vld [vmem:[#allocation3 + $0x68] sm:$0xff] }
  0x29   : > { %785 = vmatpush.msra.mxu3 %v662_v27  ;;  %v657_v43 = vld [vmem:[#allocation3] sm:$0xff]  ;;  %v828_v44 = vld [vmem:[#allocation3 + $0xb8] sm:$0xff]  ;;  %v827_v46 = vld [vmem:[#allocation3 + $0xb0] sm:$0xff]  ;;  %p2077_p2 = pneg %p2076_p1 }
  0x2a   : > { %868 = vmatpush.msrb.mxu0 %v831_v35  ;;  %v678_v45 = vld [vmem:[#allocation3 + $0x60] sm:$0xff]  ;;  %v677_v47 = vld [vmem:[#allocation3 + $0x58] sm:$0xff]  ;;  %v826_v48 = vld [vmem:[#allocation3 + $0xa8] sm:$0xff] }
  0x2b   : > { %1820 = vmatmul.msk.f32.gmra.mxu0 %vm344_vm0, %v339_v5  ;;  %786 = vmatpush.msra.mxu3 %v661_v31  ;;  %v676_v49 = vld [vmem:[#allocation3 + $0x50] sm:$0xff]  ;;  %v825_v50 = vld [vmem:[#allocation3 + $0xa0] sm:$0xff]  ;;  %v1204_v51 = vld [vmem:[#allocation3 + $0x228] sm:$0xff]  ;;  %p2082_p8 = pnand %p2081_p7, %p2077_p2 }
  0x2c   : > { %869 = vmatpush.msrb.mxu0 %v830_v38  ;;  %v1203_v52 = vld [vmem:[#allocation3 + $0x220] sm:$0xff]  ;;  %v1202_v54 = vld [vmem:[#allocation3 + $0x218] sm:$0xff]  ;;  %v1201_v58 = vld [vmem:[#allocation3 + $0x210] sm:$0xff] }
  0x2d   : > { %787 = vmatpush.msra.mxu3 %v660_v34  ;;  %v1200_v59 = vld [vmem:[#allocation3 + $0x208] sm:$0xff]  ;;  %v1199_v62 = vld [vmem:[#allocation3 + $0x200] sm:$0xff]  ;;  %v1198_v1 = vld [vmem:[#allocation3 + $0x1f8] sm:$0xff] }
  0x2e   : > { %870 = vmatpush.msrb.mxu0 %v829_v41  ;;  %v1197_v3 = vld [vmem:[#allocation3 + $0x1f0] sm:$0xff]  ;;  %v925_v24 = vld [vmem:[#allocation3 + $0x128] sm:$0xff]  ;;  %v923_v38 = vld [vmem:[#allocation3 + $0x118] sm:$0xff] }
  0x2f   : > { %788 = vmatpush.msra.mxu3 %v659_v37  ;;  %v926_v21 = vld [vmem:[#allocation3 + $0x130] sm:$0xff] }
  0x30   : > { %871 = vmatpush.msrb.mxu0 %v828_v44  ;;  %v1016_v37 = vld [vmem:[#allocation3 + $0x170] sm:$0xff] }
  0x31   : > { %789 = vmatpush.msra.mxu3 %v658_v40 }
  0x32   : > { %872 = vmatpush.msrb.mxu0 %v827_v46 }
  0x33   : > { %790 = vmatpush.msra.mxu3 %v657_v43 }
  0x34   : > { %873 = vmatpush.msrb.mxu0 %v826_v48 }
  0x36   : > { %874 = vmatpush.msrb.mxu0 %v825_v50  ;;  %v1014_v50 = vld [vmem:[#allocation3 + $0x160] sm:$0xff] }
  0xa0   : > { %v368_v6 = vpop.f32.mrf.mxu0 }
  0xa8   : > { %v371_v7 = vpop.f32.mrf.mxu0 }
  0xa9   : > { %441 = vmatpush.msra.mxu1 %v371_v7  ;;  %1913 = vmatpush.msra.mxu2 %v371_v7  ;;  %v927_v7 = vld [vmem:[#allocation3 + $0x138] sm:$0xff] }
  0xab   : > { %442 = vmatpush.msra.mxu1 %v368_v6  ;;  %1914 = vmatpush.msra.mxu2 %v368_v6 }
  0xac   : > { %1821 = vmatmul.msk.f32.vlgmr.msra.gmra.mxu1 %vm387_vm1, %v374_v8  ;;  %1832 = vmatmul.msk.f32.vlgmr.msra.gmra.mxu2 %vm387_vm1, %v385_v19  ;;  %v1019_v8 = vld [vmem:[#allocation3 + $0x188] sm:$0xff] }
  0xad   : > { %716 = vmatpush.msrb.mxu2 %v685_v22  ;;  %1235 = vmatpush.msrb.mxu1 %v1204_v51  ;;  %v1018_v22 = vld [vmem:[#allocation3 + $0x180] sm:$0xff] }
  0xae   : > { %1050 = vmatpush.msrb.mxu3 %v1019_v8 }
  0xaf   : > { %717 = vmatpush.msrb.mxu2 %v684_v26  ;;  %1236 = vmatpush.msrb.mxu1 %v1203_v52  ;;  %v924_v26 = vld [vmem:[#allocation3 + $0x120] sm:$0xff] }
  0xb0   : > { %1051 = vmatpush.msrb.mxu3 %v1018_v22  ;;  %v1010_v22 = vld [vmem:[#allocation3 + $0x140] sm:$0xff] }
  0xb1   : > { %718 = vmatpush.msrb.mxu2 %v683_v30  ;;  %1237 = vmatpush.msrb.mxu1 %v1202_v54  ;;  %v1013_v54 = vld [vmem:[#allocation3 + $0x158] sm:$0xff] }
  0xb3   : > { %719 = vmatpush.msrb.mxu2 %v682_v33  ;;  %1238 = vmatpush.msrb.mxu1 %v1201_v58  ;;  %v1012_v58 = vld [vmem:[#allocation3 + $0x150] sm:$0xff] }
  0xb4   : > { %1822 = vmatmul.msk.f32.gmra.mxu1 %vm387_vm1, %v375_v9  ;;  %1833 = vmatmul.msk.f32.gmra.mxu2 %vm387_vm1, %v386_v29  ;;  %v1196_v9 = vld [vmem:[#allocation3 + $0x1e8] sm:$0xff] }
  0xb5   : > { %720 = vmatpush.msrb.mxu2 %v681_v36  ;;  %1239 = vmatpush.msrb.mxu1 %v1200_v59  ;;  %v1110_v59 = vld [vmem:[#allocation3 + $0x1d0] sm:$0xff] }
  0xb7   : > { %721 = vmatpush.msrb.mxu2 %v680_v39  ;;  %1240 = vmatpush.msrb.mxu1 %v1199_v62  ;;  %v1015_v39 = vld [vmem:[#allocation3 + $0x168] sm:$0xff] }
  0xb9   : > { %722 = vmatpush.msrb.mxu2 %v679_v42  ;;  %1241 = vmatpush.msrb.mxu1 %v1198_v1 }
  0xbb   : > { %723 = vmatpush.msrb.mxu2 %v678_v45  ;;  %1242 = vmatpush.msrb.mxu1 %v1197_v3 }
  0xbc   : > { %1823 = vmatmul.msk.f32.gmra.mxu1 %vm387_vm1, %v376_v10  ;;  %v1195_v10 = vld [vmem:[#allocation3 + $0x1e0] sm:$0xff] }
  0xbd   : > { %724 = vmatpush.msrb.mxu2 %v677_v47  ;;  %1243 = vmatpush.msrb.mxu1 %v1196_v9  ;;  %v1107_v9 = vld [vmem:[#allocation3 + $0x1b8] sm:$0xff] }
  0xbf   : > { %725 = vmatpush.msrb.mxu2 %v676_v49  ;;  %1244 = vmatpush.msrb.mxu1 %v1195_v10  ;;  %v922_v49 = vld [vmem:[#allocation3 + $0x110] sm:$0xff] }
  0xc1   : > { %958 = vmatpush.msra.mxu2 %v927_v7  ;;  %v1011_v7 = vld [vmem:[#allocation3 + $0x148] sm:$0xff] }
  0xc3   : > { %959 = vmatpush.msra.mxu2 %v926_v21  ;;  %v1104_v21 = vld [vmem:[#allocation3 + $0x1a0] sm:$0xff] }
  0xc4   : > { %1824 = vmatmul.msk.f32.gmra.mxu1 %vm387_vm1, %v377_v11 }
  0xc5   : > { %960 = vmatpush.msra.mxu2 %v925_v24 }
  0xc7   : > { %961 = vmatpush.msra.mxu2 %v924_v26 }
  0xc9   : > { %962 = vmatpush.msra.mxu2 %v923_v38 }
  0xcb   : > { %963 = vmatpush.msra.mxu2 %v922_v49 }
  0xcc   : > { %1825 = vmatmul.msk.f32.gmra.mxu1 %vm387_vm1, %v378_v12 }
  0xd4   : > { %1826 = vmatmul.msk.f32.gmra.mxu1 %vm387_vm1, %v379_v13 }
  0xdc   : > { %1827 = vmatmul.msk.f32.gmra.mxu1 %vm387_vm1, %v380_v14 }
  0xe4   : > { %1828 = vmatmul.msk.f32.gmra.mxu1 %vm387_vm1, %v381_v15 }
  0xec   : > { %1829 = vmatmul.msk.f32.gmra.mxu1 %vm387_vm1, %v382_v16 }
  0xf4   : > { %1830 = vmatmul.msk.f32.gmra.mxu1 %vm387_vm1, %v383_v17 }
  0xfc   : > { %1831 = vmatmul.msk.f32.gmra.mxu1 %vm387_vm1, %v384_v25  ;;  %v1017_v25 = vld [vmem:[#allocation3 + $0x178] sm:$0xff] }
  0xfd   : > { %1052 = vmatpush.msrb.mxu3 %v1017_v25  ;;  %v1102_v25 = vld [vmem:[#allocation3 + $0x190] sm:$0xff] }
  0xff   : > { %1053 = vmatpush.msrb.mxu3 %v1016_v37 }
 0x101   : > { %1054 = vmatpush.msrb.mxu3 %v1015_v39 }
 0x103   : > { %1055 = vmatpush.msrb.mxu3 %v1014_v50 }
 0x105   : > { %1056 = vmatpush.msrb.mxu3 %v1013_v54  ;;  %v1385_v54 = vld [vmem:[#allocation3 + $0x2b0] sm:$0xff] }
 0x107   : > { %1057 = vmatpush.msrb.mxu3 %v1012_v58  ;;  %v1292_v58 = vld [vmem:[#allocation3 + $0x258] sm:$0xff] }
 0x109   : > { %1058 = vmatpush.msrb.mxu3 %v1011_v7 }
 0x10b   : > { %1059 = vmatpush.msrb.mxu3 %v1010_v22 }
 0x129   : > { %v444_v53 = vpop.f32.mrf.mxu1 }
 0x12a   : > { %v496_v55 = vrot.slane %v444_v53, 2  ;;  %v497_v56 = vrot.slane %v444_v53, 4  ;;  %v498_v57 = vrot.slane %v444_v53, 6  ;;  %533 = vst [vmem:[#allocation1] ss:$4 sm:$0xff] %v444_v53  ;;  %v921_v53 = vld [vmem:[#allocation3 + $0x108] sm:$0xff] }
 0x12b   : > { %964 = vmatpush.msra.mxu2 %v921_v53  ;;  %v1293_v53 = vld [vmem:[#allocation3 + $0x260] sm:$0xff] }
 0x12c   : > { %535 = vst [vmem:[#allocation1 + $0x1] ss:$4 sm:$0xff] %v496_v55  ;;  %v920_v55 = vld [vmem:[#allocation3 + $0x100] sm:$0xff] }
 0x12d   : > { %537 = vst [vmem:[#allocation1 + $0x2] ss:$4 sm:$0xff] %v497_v56  ;;  %965 = vmatpush.msra.mxu2 %v920_v55 }
 0x12e   : > { %539 = vst [vmem:[#allocation1 + $0x3] ss:$4 sm:$0xff] %v498_v57  ;;  %v1111_v57 = vld [vmem:[#allocation3 + $0x1d8] sm:$0xff] }
 0x12f   : > { %1142 = vmatpush.msra.mxu0 %v1111_v57 }
 0x131   : > { %v447_v60 = vpop.f32.mrf.mxu1  ;;  %1143 = vmatpush.msra.mxu0 %v1110_v59  ;;  %v1384_v59 = vld [vmem:[#allocation3 + $0x2a8] sm:$0xff] }
 0x132   : > { %v499_v61 = vrot.slane %v447_v60, 2  ;;  %541 = vst [vmem:[#allocation1 + $0x20] ss:$4 sm:$0xff] %v447_v60  ;;  %v500_v63 = vrot.slane %v447_v60, 4  ;;  %v501_v0 = vrot.slane %v447_v60, 6 }
 0x135   : > { %v542_v2 = vld.sshfl [vmem:[#allocation1] sm:$0xff pattern:$0x73625140] }
 0x136   : > { %544 = vst [vmem:[#allocation1] ss:$4 sm:$0xff] %v499_v61 }
 0x137   : > { %545 = vst [vmem:[#allocation1 + $0x1] ss:$4 sm:$0xff] %v500_v63 }
 0x138   : > { %546 = vst [vmem:[#allocation1 + $0x2] ss:$4 sm:$0xff] %v501_v0 }
 0x139   : > { %v543_v4 = vld.sshfl [vmem:[#allocation1 + $0x20] sm:$0xff pattern:$0x73625140]  ;;  %v450_v5 = vpop.f32.mrf.mxu1  ;;  %628 = vst.msk [vmem:[#allocation2] sm:$0xff] %vm627_vm2, %v542_v2 }
 0x13a   : > { %v502_v6 = vrot.slane %v450_v5, 2  ;;  %547 = vst [vmem:[#allocation1 + $0x3] ss:$4 sm:$0xff] %v450_v5  ;;  %v503_v11 = vrot.slane %v450_v5, 4  ;;  %v504_v13 = vrot.slane %v450_v5, 6  ;;  %v1108_v5 = vld [vmem:[#allocation3 + $0x1c0] sm:$0xff] }
 0x13b   : > { %630 = vst.msk [vmem:[#allocation2 + $0x8] sm:$0x3] %vm629_vm3, %v543_v4  ;;  %v1109_v4 = vld [vmem:[#allocation3 + $0x1c8] sm:$0xff] }
 0x13c   : > { %548 = vst [vmem:[#allocation1 + $0x20] ss:$4 sm:$0xff] %v502_v6  ;;  %v919_v6 = vld [vmem:[#allocation3 + $0xf8] sm:$0xff]  ;;  %1144 = vmatpush.msra.mxu0 %v1109_v4 }
 0x13d   : > { %966 = vmatpush.msra.mxu2 %v919_v6  ;;  %v477_v6 = vpop.f32.mrf.mxu2 }
 0x13e   : > { %1145 = vmatpush.msra.mxu0 %v1108_v5  ;;  %v529_v7 = vrot.slane %v477_v6, 2 }
 0x140   : > { %v649_v12 = vld [vmem:[#allocation2] sm:$0xff]  ;;  %1146 = vmatpush.msra.mxu0 %v1107_v9 }
 0x141   : > { %v549_v14 = vld.sshfl [vmem:[#allocation1] sm:$0xff pattern:$0x73625140]  ;;  %1842 = vmatmul.msk.f32.vlgmr.msra.gmra.mxu3 %vm627_vm2, %v649_v12  ;;  %v453_v15 = vpop.f32.mrf.mxu1 }
 0x142   : > { %551 = vst [vmem:[#allocation1] ss:$4 sm:$0xff] %v503_v11  ;;  %v505_v16 = vrot.slane %v453_v15, 2  ;;  %v667_v17 = vld [vmem:[#allocation2 + $0x1] sm:$0xff]  ;;  %v506_v18 = vrot.slane %v453_v15, 4  ;;  %v507_v28 = vrot.slane %v453_v15, 6 }
 0x143   : > { %552 = vst [vmem:[#allocation1 + $0x1] ss:$4 sm:$0xff] %v504_v13  ;;  %1834 = vmatmul.msk.f32.vlgmr.msrb.gmra.mxu2 %vm627_vm2, %v667_v17  ;;  %v816_v19 = vld [vmem:[#allocation2 + $0x2] sm:$0xff]  ;;  %v550_v20 = vld.sshfl [vmem:[#allocation1 + $0x20] sm:$0xff pattern:$0x73625140] }
 0x144   : > { %631 = vst.msk [vmem:[#allocation2 + $0x10] sm:$0xff] %vm627_vm2, %v549_v14  ;;  %1850 = vmatmul.msk.f32.vlgmr.msrb.gmra.mxu0 %vm627_vm2, %v816_v19  ;;  %v1105_v19 = vld [vmem:[#allocation3 + $0x1a8] sm:$0xff] }
 0x145   : > { %553 = vst [vmem:[#allocation1 + $0x2] ss:$4 sm:$0xff] %v453_v15  ;;  %v1106_v15 = vld [vmem:[#allocation3 + $0x1b0] sm:$0xff]  ;;  %v480_v9 = vpop.f32.mrf.mxu2 }
 0x146   : > { %554 = vst [vmem:[#allocation1 + $0x3] ss:$4 sm:$0xff] %v505_v16  ;;  %1147 = vmatpush.msra.mxu0 %v1106_v15  ;;  %v1288_v15 = vld [vmem:[#allocation3 + $0x238] sm:$0xff] }
 0x147   : > { %555 = vst [vmem:[#allocation1 + $0x20] ss:$4 sm:$0xff] %v506_v18 }
 0x148   : > { %632 = vst.msk [vmem:[#allocation2 + $0x18] sm:$0x3] %vm629_vm3, %v550_v20  ;;  %v918_v20 = vld [vmem:[#allocation3 + $0xf0] sm:$0xff]  ;;  %1148 = vmatpush.msra.mxu0 %v1105_v19  ;;  %v1379_v19 = vld [vmem:[#allocation3 + $0x280] sm:$0xff] }
 0x149   : > { %v456_v23 = vpop.f32.mrf.mxu1  ;;  %967 = vmatpush.msra.mxu2 %v918_v20 }
 0x14a   : > { %v508_v30 = vrot.slane %v456_v23, 2  ;;  %v509_v31 = vrot.slane %v456_v23, 4  ;;  %v510_v32 = vrot.slane %v456_v23, 6  ;;  %1149 = vmatpush.msra.mxu0 %v1104_v21 }
 0x14b   : > { %v2330_v27 = vld [vmem:[#allocation2 + $0x10] sm:$0xff] }
 0x14c   : > { %1843 = vmatmul.msk.f32.gmra.mxu3 %vm627_vm2, %v2330_v27 }
 0x14d   : > { %v556_v29 = vld.sshfl [vmem:[#allocation1] sm:$0xff pattern:$0x73625140] }
 0x14e   : > { %558 = vst [vmem:[#allocation1] ss:$4 sm:$0xff] %v507_v28  ;;  %v557_v35 = vld.sshfl [vmem:[#allocation1 + $0x20] sm:$0xff pattern:$0x73625140] }
 0x14f   : > { %633 = vst.msk [vmem:[#allocation2 + $0x20] sm:$0xff] %vm627_vm2, %v556_v29  ;;  %v2335_v33 = vld [vmem:[#allocation2 + $0x11] sm:$0xff] }
 0x150   : > { %v2337_v34 = vld [vmem:[#allocation2 + $0x12] sm:$0xff]  ;;  %559 = vst [vmem:[#allocation1 + $0x1] ss:$4 sm:$0xff] %v456_v23  ;;  %1835 = vmatmul.msk.f32.gmra.mxu2 %vm627_vm2, %v2335_v33 }
 0x151   : > { %1851 = vmatmul.msk.f32.gmra.mxu0 %vm627_vm2, %v2337_v34  ;;  %560 = vst [vmem:[#allocation1 + $0x2] ss:$4 sm:$0xff] %v508_v30  ;;  %v459_v36 = vpop.f32.mrf.mxu1  ;;  %v1103_v23 = vld [vmem:[#allocation3 + $0x198] sm:$0xff]  ;;  %v1388_v30 = vld [vmem:[#allocation3 + $0x2c8] sm:$0xff] }
 0x152   : > { %561 = vst [vmem:[#allocation1 + $0x3] ss:$4 sm:$0xff] %v509_v31  ;;  %v511_v41 = vrot.slane %v459_v36, 2  ;;  %v512_v43 = vrot.slane %v459_v36, 4  ;;  %v513_v44 = vrot.slane %v459_v36, 6  ;;  %1150 = vmatpush.msra.mxu0 %v1103_v23  ;;  %v1296_v29 = vld [vmem:[#allocation3 + $0x278] sm:$0xff]  ;;  %1419 = vmatpush.msra.mxu3 %v1388_v30 }
 0x153   : > { %562 = vst [vmem:[#allocation1 + $0x20] ss:$4 sm:$0xff] %v510_v32  ;;  %v1295_v31 = vld [vmem:[#allocation3 + $0x270] sm:$0xff]  ;;  %1327 = vmatpush.msrb.mxu2 %v1296_v29 }
 0x154   : > { %634 = vst.msk [vmem:[#allocation2 + $0x28] sm:$0x3] %vm629_vm3, %v557_v35  ;;  %1151 = vmatpush.msra.mxu0 %v1102_v25 }
 0x155   : > { %1328 = vmatpush.msrb.mxu2 %v1295_v31 }
 0x156   : > { %v2344_v40 = vld [vmem:[#allocation2 + $0x20] sm:$0xff] }
 0x157   : > { %1844 = vmatmul.msk.f32.gmra.mxu3 %vm627_vm2, %v2344_v40  ;;  %1882 = vmatmul.msk.f32.vlgmr.msrb.gmra.mxu1 %vm627_vm2, %v2344_v40 }
 0x159   : > { %v563_v42 = vld.sshfl [vmem:[#allocation1] sm:$0xff pattern:$0x73625140]  ;;  %v462_v47 = vpop.f32.mrf.mxu1 }
 0x15a   : > { %635 = vst.msk [vmem:[#allocation2 + $0x30] sm:$0xff] %vm627_vm2, %v563_v42  ;;  %v564_v48 = vld.sshfl [vmem:[#allocation1 + $0x20] sm:$0xff pattern:$0x73625140]  ;;  %v514_v52 = vrot.slane %v462_v47, 2  ;;  %v515_v56 = vrot.slane %v462_v47, 4 }
 0x15b   : > { %565 = vst [vmem:[#allocation1] ss:$4 sm:$0xff] %v459_v36  ;;  %v2351_v45 = vld [vmem:[#allocation2 + $0x21] sm:$0xff]  ;;  %v516_v61 = vrot.slane %v462_v47, 6 }
 0x15c   : > { %v2353_v46 = vld [vmem:[#allocation2 + $0x22] sm:$0xff]  ;;  %566 = vst [vmem:[#allocation1 + $0x1] ss:$4 sm:$0xff] %v511_v41  ;;  %1836 = vmatmul.msk.f32.gmra.mxu2 %vm627_vm2, %v2351_v45 }
 0x15d   : > { %1852 = vmatmul.msk.f32.gmra.mxu0 %vm627_vm2, %v2353_v46  ;;  %567 = vst [vmem:[#allocation1 + $0x2] ss:$4 sm:$0xff] %v512_v43  ;;  %v1387_v42 = vld [vmem:[#allocation3 + $0x2c0] sm:$0xff]  ;;  %v1294_v43 = vld [vmem:[#allocation3 + $0x268] sm:$0xff] }
 0x15e   : > { %568 = vst [vmem:[#allocation1 + $0x3] ss:$4 sm:$0xff] %v513_v44  ;;  %1420 = vmatpush.msra.mxu3 %v1387_v42  ;;  %1329 = vmatpush.msrb.mxu2 %v1294_v43  ;;  %v1386_v44 = vld [vmem:[#allocation3 + $0x2b8] sm:$0xff]  ;;  %v1488_v43 = vld [vmem:[#allocation6 + $0x70] sm:$0xff] }
 0x15f   : > { %569 = vst [vmem:[#allocation1 + $0x20] ss:$4 sm:$0xff] %v462_v47 }
 0x160   : > { %636 = vst.msk [vmem:[#allocation2 + $0x38] sm:$0x3] %vm629_vm3, %v564_v48  ;;  %1421 = vmatpush.msra.mxu3 %v1386_v44  ;;  %1330 = vmatpush.msrb.mxu2 %v1293_v53  ;;  %v1487_v44 = vld [vmem:[#allocation6 + $0x68] sm:$0xff]  ;;  %v1486_v53 = vld [vmem:[#allocation6 + $0x60] sm:$0xff] }
 0x161   : > { %v2360_v51 = vld [vmem:[#allocation2 + $0x30] sm:$0xff]  ;;  %v465_v62 = vpop.f32.mrf.mxu1 }
 0x162   : > { %1845 = vmatmul.msk.f32.gmra.mxu3 %vm627_vm2, %v2360_v51  ;;  %1883 = vmatmul.msk.f32.gmra.mxu1 %vm627_vm2, %v2360_v51  ;;  %v517_v2 = vrot.slane %v465_v62, 2  ;;  %v518_v10 = vrot.slane %v465_v62, 4  ;;  %v519_v13 = vrot.slane %v465_v62, 6 }
 0x163   : > { %1422 = vmatpush.msra.mxu3 %v1385_v54  ;;  %1331 = vmatpush.msrb.mxu2 %v1292_v58  ;;  %v1485_v54 = vld [vmem:[#allocation6 + $0x58] sm:$0xff]  ;;  %v1484_v58 = vld [vmem:[#allocation6 + $0x50] sm:$0xff] }
 0x165   : > { %v570_v60 = vld.sshfl [vmem:[#allocation1] sm:$0xff pattern:$0x73625140]  ;;  %1423 = vmatpush.msra.mxu3 %v1384_v59 }
 0x166   : > { %637 = vst.msk [vmem:[#allocation2 + $0x40] sm:$0xff] %vm627_vm2, %v570_v60  ;;  %v571_v63 = vld.sshfl [vmem:[#allocation1 + $0x20] sm:$0xff pattern:$0x73625140]  ;;  %v1291_v60 = vld [vmem:[#allocation3 + $0x250] sm:$0xff] }
 0x167   : > { %572 = vst [vmem:[#allocation1] ss:$4 sm:$0xff] %v514_v52  ;;  %v2367_v0 = vld [vmem:[#allocation2 + $0x31] sm:$0xff]  ;;  %1332 = vmatpush.msrb.mxu2 %v1291_v60 }
 0x168   : > { %v2369_v1 = vld [vmem:[#allocation2 + $0x32] sm:$0xff]  ;;  %573 = vst [vmem:[#allocation1 + $0x1] ss:$4 sm:$0xff] %v515_v56  ;;  %1837 = vmatmul.msk.f32.gmra.mxu2 %vm627_vm2, %v2367_v0 }
 0x169   : > { %1853 = vmatmul.msk.f32.gmra.mxu0 %vm627_vm2, %v2369_v1  ;;  %574 = vst [vmem:[#allocation1 + $0x2] ss:$4 sm:$0xff] %v516_v61  ;;  %v468_v8 = vpop.f32.mrf.mxu1  ;;  %v1483_v59 = vld [vmem:[#allocation6 + $0x48] sm:$0xff] }
 0x16a   : > { %638 = vst.msk [vmem:[#allocation2 + $0x48] sm:$0x3] %vm629_vm3, %v571_v63  ;;  %v520_v16 = vrot.slane %v468_v8, 2  ;;  %v521_v17 = vrot.slane %v468_v8, 4  ;;  %v522_v28 = vrot.slane %v468_v8, 6  ;;  %v1290_v63 = vld [vmem:[#allocation3 + $0x248] sm:$0xff] }
 0x16b   : > { %575 = vst [vmem:[#allocation1 + $0x3] ss:$4 sm:$0xff] %v465_v62  ;;  %v1383_v62 = vld [vmem:[#allocation3 + $0x2a0] sm:$0xff]  ;;  %1333 = vmatpush.msrb.mxu2 %v1290_v63  ;;  %v1482_v63 = vld [vmem:[#allocation6 + $0x40] sm:$0xff] }
 0x16c   : > { %576 = vst [vmem:[#allocation1 + $0x20] ss:$4 sm:$0xff] %v517_v2  ;;  %1424 = vmatpush.msra.mxu3 %v1383_v62 }
 0x16d   : > { %v2376_v3 = vld [vmem:[#allocation2 + $0x40] sm:$0xff] }
 0x16e   : > { %1846 = vmatmul.msk.f32.gmra.mxu3 %vm627_vm2, %v2376_v3  ;;  %1884 = vmatmul.msk.f32.gmra.mxu1 %vm627_vm2, %v2376_v3 }
 0x171   : > { %v2382_v11 = vld [vmem:[#allocation2 + $0x41] sm:$0xff]  ;;  %v471_v24 = vpop.f32.mrf.mxu1 }
 0x172   : > { %v2384_v12 = vld [vmem:[#allocation2 + $0x42] sm:$0xff]  ;;  %v577_v14 = vld.sshfl [vmem:[#allocation1] sm:$0xff pattern:$0x73625140]  ;;  %1838 = vmatmul.msk.f32.gmra.mxu2 %vm627_vm2, %v2382_v11  ;;  %v523_v35 = vrot.slane %v471_v24, 2  ;;  %v524_v36 = vrot.slane %v471_v24, 4 }
 0x173   : > { %1854 = vmatmul.msk.f32.gmra.mxu0 %vm627_vm2, %v2384_v12  ;;  %579 = vst [vmem:[#allocation1] ss:$4 sm:$0xff] %v518_v10  ;;  %v578_v18 = vld.sshfl [vmem:[#allocation1 + $0x20] sm:$0xff pattern:$0x73625140]  ;;  %v525_v37 = vrot.slane %v471_v24, 6 }
 0x174   : > { %580 = vst [vmem:[#allocation1 + $0x1] ss:$4 sm:$0xff] %v519_v13 }
 0x175   : > { %639 = vst.msk [vmem:[#allocation2 + $0x50] sm:$0xff] %vm627_vm2, %v577_v14  ;;  %v531_v14 = vrot.slane %v477_v6, 6 }
 0x176   : > { %581 = vst [vmem:[#allocation1 + $0x2] ss:$4 sm:$0xff] %v468_v8  ;;  %v530_v8 = vrot.slane %v477_v6, 4 }
 0x177   : > { %582 = vst [vmem:[#allocation1 + $0x3] ss:$4 sm:$0xff] %v520_v16  ;;  %v1380_v16 = vld [vmem:[#allocation3 + $0x288] sm:$0xff] }
 0x178   : > { %583 = vst [vmem:[#allocation1 + $0x20] ss:$4 sm:$0xff] %v521_v17 }
 0x179   : > { %640 = vst.msk [vmem:[#allocation2 + $0x58] sm:$0x3] %vm629_vm3, %v578_v18  ;;  %v474_v61 = vpop.f32.mrf.mxu1 }
 0x17a   : > { %v526_v2 = vrot.slane %v474_v61, 2  ;;  %v527_v4 = vrot.slane %v474_v61, 4  ;;  %v528_v5 = vrot.slane %v474_v61, 6 }
 0x17c   : > { %v2392_v26 = vld [vmem:[#allocation2 + $0x50] sm:$0xff] }
 0x17d   : > { %1847 = vmatmul.msk.f32.gmra.mxu3 %vm627_vm2, %v2392_v26  ;;  %1885 = vmatmul.msk.f32.gmra.mxu1 %vm627_vm2, %v2392_v26 }
 0x17e   : > { %v584_v32 = vld.sshfl [vmem:[#allocation1] sm:$0xff pattern:$0x73625140] }
 0x17f   : > { %586 = vst [vmem:[#allocation1] ss:$4 sm:$0xff] %v522_v28  ;;  %v585_v41 = vld.sshfl [vmem:[#allocation1 + $0x20] sm:$0xff pattern:$0x73625140] }
 0x180   : > { %641 = vst.msk [vmem:[#allocation2 + $0x60] sm:$0xff] %vm627_vm2, %v584_v32  ;;  %v2399_v38 = vld [vmem:[#allocation2 + $0x51] sm:$0xff] }
 0x181   : > { %v2401_v39 = vld [vmem:[#allocation2 + $0x52] sm:$0xff]  ;;  %587 = vst [vmem:[#allocation1 + $0x1] ss:$4 sm:$0xff] %v471_v24  ;;  %1839 = vmatmul.msk.f32.gmra.mxu2 %vm627_vm2, %v2399_v38 }
 0x182   : > { %1855 = vmatmul.msk.f32.gmra.mxu0 %vm627_vm2, %v2401_v39  ;;  %588 = vst [vmem:[#allocation1 + $0x2] ss:$4 sm:$0xff] %v523_v35 }
 0x183   : > { %589 = vst [vmem:[#allocation1 + $0x3] ss:$4 sm:$0xff] %v524_v36 }
 0x184   : > { %590 = vst [vmem:[#allocation1 + $0x20] ss:$4 sm:$0xff] %v525_v37 }
 0x185   : > { %642 = vst.msk [vmem:[#allocation2 + $0x68] sm:$0x3] %vm629_vm3, %v585_v41 }
 0x187   : > { %v2408_v47 = vld [vmem:[#allocation2 + $0x60] sm:$0xff] }
 0x188   : > { %1848 = vmatmul.msk.f32.gmra.mxu3 %vm627_vm2, %v2408_v47  ;;  %1886 = vmatmul.msk.f32.gmra.mxu1 %vm627_vm2, %v2408_v47 }
 0x18a   : > { %v591_v48 = vld.sshfl [vmem:[#allocation1] sm:$0xff pattern:$0x73625140] }
 0x18b   : > { %v592_v49 = vld.sshfl [vmem:[#allocation1 + $0x20] sm:$0xff pattern:$0x73625140]  ;;  %643 = vst.msk [vmem:[#allocation2 + $0x70] sm:$0xff] %vm627_vm2, %v591_v48 }
 0x18c   : > { %v2415_v50 = vld [vmem:[#allocation2 + $0x61] sm:$0xff]  ;;  %644 = vst.msk [vmem:[#allocation2 + $0x78] sm:$0x3] %vm629_vm3, %v592_v49 }
 0x18d   : > { %v2417_v52 = vld [vmem:[#allocation2 + $0x62] sm:$0xff]  ;;  %1840 = vmatmul.msk.f32.gmra.mxu2 %vm627_vm2, %v2415_v50  ;;  %593 = vst [vmem:[#allocation1] ss:$4 sm:$0xff] %v474_v61 }
 0x18e   : > { %1856 = vmatmul.msk.f32.gmra.mxu0 %vm627_vm2, %v2417_v52  ;;  %597 = vst [vmem:[#allocation1 + $0x20] ss:$4 sm:$0xff] %v477_v6 }
 0x18f   : > { %594 = vst [vmem:[#allocation1 + $0x1] ss:$4 sm:$0xff] %v526_v2  ;;  %v1481_v2 = vld [vmem:[#allocation6 + $0x38] sm:$0xff] }
 0x190   : > { %595 = vst [vmem:[#allocation1 + $0x2] ss:$4 sm:$0xff] %v527_v4 }
 0x191   : > { %596 = vst [vmem:[#allocation1 + $0x3] ss:$4 sm:$0xff] %v528_v5 }
 0x192   : > { %v2424_v55 = vld [vmem:[#allocation2 + $0x70] sm:$0xff] }
 0x193   : > { %v2426_v56 = vld [vmem:[#allocation2 + $0x71] sm:$0xff]  ;;  %1849 = vmatmul.msk.f32.gmra.mxu3 %vm627_vm2, %v2424_v55  ;;  %1887 = vmatmul.msk.f32.gmra.mxu1 %vm627_vm2, %v2424_v55 }
 0x194   : > { %v2430_v57 = vld [vmem:[#allocation2 + $0x72] sm:$0xff] }
 0x195   : > { %1841 = vmatmul.msk.f32.gmra.mxu2 %vm627_vm2, %v2426_v56  ;;  %v599_v10 = vld.sshfl [vmem:[#allocation1 + $0x20] sm:$0xff pattern:$0x73625140] }
 0x196   : > { %1857 = vmatmul.msk.f32.gmra.mxu0 %vm627_vm2, %v2430_v57  ;;  %646 = vst.msk [vmem:[#allocation2 + $0x88] sm:$0x3] %vm629_vm3, %v599_v10  ;;  %v1477_v10 = vld [vmem:[#allocation6 + $0x18] sm:$0xff] }
 0x198   : > { %v598_v13 = vld.sshfl [vmem:[#allocation1] sm:$0xff pattern:$0x73625140] }
 0x199   : > { %645 = vst.msk [vmem:[#allocation2 + $0x80] sm:$0xff] %vm627_vm2, %v598_v13 }
 0x19a   : > { %600 = vst [vmem:[#allocation1] ss:$4 sm:$0xff] %v529_v7 }
 0x19b   : > { %1866 = vmatmul.msk.f32.vlgmr.msrb.gmra.mxu3 %vm627_vm2, %v2335_v33  ;;  %v1289_v33 = vld [vmem:[#allocation3 + $0x240] sm:$0xff]  ;;  %601 = vst [vmem:[#allocation1 + $0x1] ss:$4 sm:$0xff] %v530_v8 }
 0x19c   : > { %1334 = vmatpush.msrb.mxu2 %v1289_v33  ;;  %602 = vst [vmem:[#allocation1 + $0x2] ss:$4 sm:$0xff] %v531_v14  ;;  %v1479_v33 = vld [vmem:[#allocation6 + $0x28] sm:$0xff] }
 0x19d   : > { %1858 = vmatmul.msk.f32.vlgmr.msra.gmra.mxu2 %vm627_vm2, %v2330_v27  ;;  %v1382_v27 = vld [vmem:[#allocation3 + $0x298] sm:$0xff]  ;;  %603 = vst [vmem:[#allocation1 + $0x3] ss:$4 sm:$0xff] %v480_v9 }
 0x19e   : > { %1874 = vmatmul.msk.f32.vlgmr.msra.gmra.mxu0 %vm627_vm2, %v2337_v34  ;;  %v1381_v34 = vld [vmem:[#allocation3 + $0x290] sm:$0xff]  ;;  %1425 = vmatpush.msra.mxu3 %v1382_v27  ;;  %v1480_v27 = vld [vmem:[#allocation6 + $0x30] sm:$0xff] }
 0x19f   : > { %1335 = vmatpush.msrb.mxu2 %v1288_v15  ;;  %v1476_v15 = vld [vmem:[#allocation6 + $0x10] sm:$0xff] }
 0x1a0   : > { %1426 = vmatpush.msra.mxu3 %v1381_v34  ;;  %v1192_v17 = vld [vmem:[#allocation2 + $0x80] sm:$0xff] }
 0x1a1   : > { %1888 = vmatmul.msk.f32.gmra.mxu1 %vm627_vm2, %v1192_v17  ;;  %v1008_v24 = vld [vmem:[#allocation2 + $0x81] sm:$0xff] }
 0x1a2   : > { %1427 = vmatpush.msra.mxu3 %v1380_v16  ;;  %v1100_v28 = vld [vmem:[#allocation2 + $0x82] sm:$0xff]  ;;  %v1475_v16 = vld [vmem:[#allocation6 + $0x8] sm:$0xff] }
 0x1a3   : > { %1867 = vmatmul.msk.f32.gmra.mxu3 %vm627_vm2, %v2351_v45 }
 0x1a4   : > { %v605_v18 = vld.sshfl [vmem:[#allocation1] sm:$0xff pattern:$0x73625140]  ;;  %1428 = vmatpush.msra.mxu3 %v1379_v19  ;;  %v1474_v19 = vld [vmem:[#allocation6] sm:$0xff] }
 0x1a5   : > { %1859 = vmatmul.msk.f32.gmra.mxu2 %vm627_vm2, %v2344_v40  ;;  %v532_v40 = vrot.slane %v480_v9, 2  ;;  %647 = vst.msk [vmem:[#allocation2 + $0x90] sm:$0xff] %vm627_vm2, %v605_v18  ;;  %v1478_v9 = vld [vmem:[#allocation6 + $0x20] sm:$0xff] }
 0x1a6   : > { %1875 = vmatmul.msk.f32.gmra.mxu0 %vm627_vm2, %v2353_v46 }
 0x1a7   : > { %604 = vst [vmem:[#allocation1 + $0x20] ss:$4 sm:$0xff] %v532_v40 }
 0x1ab   : > { %1868 = vmatmul.msk.f32.gmra.mxu3 %vm627_vm2, %v2367_v0 }
 0x1ad   : > { %1860 = vmatmul.msk.f32.gmra.mxu2 %vm627_vm2, %v2360_v51  ;;  %v1287_v51 = vld [vmem:[#allocation3 + $0x230] sm:$0xff] }
 0x1ae   : > { %1876 = vmatmul.msk.f32.gmra.mxu0 %vm627_vm2, %v2369_v1  ;;  %1336 = vmatpush.msrb.mxu2 %v1287_v51  ;;  %v606_v20 = vld.sshfl [vmem:[#allocation1 + $0x20] sm:$0xff pattern:$0x73625140] }
 0x1af   : > { %648 = vst.msk [vmem:[#allocation2 + $0x98] sm:$0x3] %vm629_vm3, %v606_v20 }
 0x1b3   : > { %1869 = vmatmul.msk.f32.gmra.mxu3 %vm627_vm2, %v2382_v11 }
 0x1b5   : > { %1861 = vmatmul.msk.f32.gmra.mxu2 %vm627_vm2, %v2376_v3  ;;  %v1193_v3 = vld [vmem:[#allocation2 + $0x90] sm:$0xff] }
 0x1b6   : > { %1877 = vmatmul.msk.f32.gmra.mxu0 %vm627_vm2, %v2384_v12  ;;  %1889 = vmatmul.msk.f32.gmra.mxu1 %vm627_vm2, %v1193_v3  ;;  %v1377_v49 = vld [vmem:[#allocation2 + $0x92] sm:$0xff] }
 0x1bb   : > { %1870 = vmatmul.msk.f32.gmra.mxu3 %vm627_vm2, %v2399_v38 }
 0x1bd   : > { %1862 = vmatmul.msk.f32.gmra.mxu2 %vm627_vm2, %v2392_v26 }
 0x1be   : > { %1878 = vmatmul.msk.f32.gmra.mxu0 %vm627_vm2, %v2401_v39 }
 0x1c3   : > { %1871 = vmatmul.msk.f32.gmra.mxu3 %vm627_vm2, %v2415_v50 }
 0x1c4   : > { %v792_v21 = vpop.f32.mrf.mxu3 }
 0x1c5   : > { %1863 = vmatmul.msk.f32.gmra.mxu2 %vm627_vm2, %v2408_v47 }
 0x1c6   : > { %1879 = vmatmul.msk.f32.gmra.mxu0 %vm627_vm2, %v2417_v52  ;;  %v727_v22 = vpop.f32.mrf.mxu2 }
 0x1c7   : > { %v2480_v23 = vadd.f32 %v792_v21, %v727_v22 }
 0x1cb   : > { %1872 = vmatmul.msk.f32.gmra.mxu3 %vm627_vm2, %v2426_v56 }
 0x1cd   : > { %1864 = vmatmul.msk.f32.gmra.mxu2 %vm627_vm2, %v2424_v55 }
 0x1ce   : > { %1880 = vmatmul.msk.f32.gmra.mxu0 %vm627_vm2, %v2430_v57 }
 0x1cf   : > { %v795_v25 = vpop.f32.mrf.mxu3 }
 0x1d3   : > { %1873 = vmatmul.msk.f32.gmra.mxu3 %vm627_vm2, %v1008_v24  ;;  %v730_v26 = vpop.f32.mrf.mxu2 }
 0x1d4   : > { %v2489_v29 = vadd.f32 %v795_v25, %v730_v26 }
 0x1d5   : > { %1865 = vmatmul.msk.f32.gmra.mxu2 %vm627_vm2, %v1192_v17 }
 0x1d6   : > { %1881 = vmatmul.msk.f32.gmra.mxu0 %vm627_vm2, %v1100_v28 }
 0x1da   : > { %v798_v30 = vpop.f32.mrf.mxu3 }
 0x1db   : > { %1898 = vmatmul.msk.f32.vlgmr.msra.gmra.mxu3 %vm627_vm2, %v2353_v46 }
 0x1dd   : > { %1890 = vmatmul.msk.f32.vlgmr.msrb.gmra.mxu2 %vm627_vm2, %v2351_v45 }
 0x1df   : > { %v733_v31 = vpop.f32.mrf.mxu2 }
 0x1e0   : > { %v2497_v32 = vadd.f32 %v798_v30, %v733_v31 }
 0x1e3   : > { %1899 = vmatmul.msk.f32.gmra.mxu3 %vm627_vm2, %v2369_v1 }
 0x1e5   : > { %1891 = vmatmul.msk.f32.gmra.mxu2 %vm627_vm2, %v2367_v0  ;;  %v801_v35 = vpop.f32.mrf.mxu3  ;;  %v2519_v0 = vpop.f32.mrf.mxu0 }
 0x1e6   : > { %v900_v25 = vadd.f32 %v2519_v0, %v2480_v23 }
 0x1eb   : > { %1900 = vmatmul.msk.f32.gmra.mxu3 %vm627_vm2, %v2384_v12  ;;  %v736_v36 = vpop.f32.mrf.mxu2 }
 0x1ec   : > { %v2505_v37 = vadd.f32 %v801_v35, %v736_v36 }
 0x1ed   : > { %1892 = vmatmul.msk.f32.gmra.mxu2 %vm627_vm2, %v2382_v11  ;;  %v2527_v41 = vpop.f32.mrf.mxu0 }
 0x1f1   : > { %v804_v45 = vpop.f32.mrf.mxu3 }
 0x1f3   : > { %1901 = vmatmul.msk.f32.gmra.mxu3 %vm627_vm2, %v2401_v39  ;;  %v1489_v39 = vld [vmem:[#allocation6 + $0x78] sm:$0xff] }
 0x1f4   : > { %1490 = vmatpush.msrb.mxu0 %v1489_v39  ;;  %1547 = vmatpush.msra.mxu1 %v1489_v39 }
 0x1f5   : > { %1893 = vmatmul.msk.f32.gmra.mxu2 %vm627_vm2, %v2399_v38  ;;  %v739_v46 = vpop.f32.mrf.mxu2 }
 0x1f6   : > { %v2513_v1 = vadd.f32 %v804_v45, %v739_v46  ;;  %1491 = vmatpush.msrb.mxu0 %v1488_v43  ;;  %1548 = vmatpush.msra.mxu1 %v1488_v43  ;;  %v901_v45 = vadd.f32 %v2527_v41, %v2489_v29 }
 0x1f8   : > { %1492 = vmatpush.msrb.mxu0 %v1487_v44  ;;  %1549 = vmatpush.msra.mxu1 %v1487_v44 }
 0x1fa   : > { %1493 = vmatpush.msrb.mxu0 %v1486_v53  ;;  %1550 = vmatpush.msra.mxu1 %v1486_v53 }
 0x1fb   : > { %1902 = vmatmul.msk.f32.gmra.mxu3 %vm627_vm2, %v2417_v52  ;;  %v1285_v52 = vld [vmem:[#allocation2 + $0x91] sm:$0xff] }
 0x1fc   : > { %1494 = vmatpush.msrb.mxu0 %v1485_v54  ;;  %1551 = vmatpush.msra.mxu1 %v1485_v54 }
 0x1fd   : > { %1894 = vmatmul.msk.f32.gmra.mxu2 %vm627_vm2, %v2415_v50  ;;  %v2534_v50 = vpop.f32.mrf.mxu0 }
 0x1fe   : > { %1495 = vmatpush.msrb.mxu0 %v1484_v58  ;;  %1552 = vmatpush.msra.mxu1 %v1484_v58  ;;  %v902_v23 = vadd.f32 %v2534_v50, %v2497_v32 }
 0x200   : > { %v807_v11 = vpop.f32.mrf.mxu3  ;;  %1496 = vmatpush.msrb.mxu0 %v1483_v59  ;;  %1553 = vmatpush.msra.mxu1 %v1483_v59 }
 0x202   : > { %1497 = vmatpush.msrb.mxu0 %v1482_v63  ;;  %1554 = vmatpush.msra.mxu1 %v1482_v63 }
 0x203   : > { %1903 = vmatmul.msk.f32.gmra.mxu3 %vm627_vm2, %v2430_v57 }
 0x204   : > { %v742_v12 = vpop.f32.mrf.mxu2  ;;  %1498 = vmatpush.msrb.mxu0 %v1481_v2  ;;  %1555 = vmatpush.msra.mxu1 %v1481_v2 }
 0x205   : > { %1895 = vmatmul.msk.f32.gmra.mxu2 %vm627_vm2, %v2426_v56  ;;  %v2525_v38 = vadd.f32 %v807_v11, %v742_v12  ;;  %v2539_v60 = vpop.f32.mrf.mxu0 }
 0x206   : > { %1499 = vmatpush.msrb.mxu0 %v1480_v27  ;;  %1556 = vmatpush.msra.mxu1 %v1480_v27  ;;  %v903_v32 = vadd.f32 %v2539_v60, %v2505_v37 }
 0x208   : > { %1500 = vmatpush.msrb.mxu0 %v1479_v33  ;;  %1557 = vmatpush.msra.mxu1 %v1479_v33 }
 0x20a   : > { %1501 = vmatpush.msrb.mxu0 %v1478_v9  ;;  %1558 = vmatpush.msra.mxu1 %v1478_v9 }
 0x20b   : > { %1904 = vmatmul.msk.f32.gmra.mxu3 %vm627_vm2, %v1100_v28  ;;  %v810_v42 = vpop.f32.mrf.mxu3  ;;  %v1246_v28 = vpop.f32.mrf.mxu1 }
 0x20c   : > { %1502 = vmatpush.msrb.mxu0 %v1477_v10  ;;  %1559 = vmatpush.msra.mxu1 %v1477_v10 }
 0x20d   : > { %1896 = vmatmul.msk.f32.gmra.mxu2 %vm627_vm2, %v1008_v24  ;;  %v2541_v4 = vpop.f32.mrf.mxu0 }
 0x20e   : > { %1503 = vmatpush.msrb.mxu0 %v1476_v15  ;;  %1560 = vmatpush.msra.mxu1 %v1476_v15 }
 0x210   : > { %v745_v47 = vpop.f32.mrf.mxu2  ;;  %1504 = vmatpush.msrb.mxu0 %v1475_v16  ;;  %1561 = vmatpush.msra.mxu1 %v1475_v16 }
 0x211   : > { %v2531_v48 = vadd.f32 %v810_v42, %v745_v47 }
 0x212   : > { %1505 = vmatpush.msrb.mxu0 %v1474_v19  ;;  %1562 = vmatpush.msra.mxu1 %v1474_v19 }
 0x213   : > { %1905 = vmatmul.msk.f32.gmra.mxu3 %vm627_vm2, %v1377_v49  ;;  %v1249_v39 = vpop.f32.mrf.mxu1  ;;  %v2570_v49 = vld [vmem:[%s2720_s4] ss:$0 sm:$0xff] }
 0x215   : > { %1897 = vmatmul.msk.f32.gmra.mxu2 %vm627_vm2, %v1285_v52  ;;  %v2543_v34 = vpop.f32.mrf.mxu0 }
 0x216   : > { %v813_v55 = vpop.f32.mrf.mxu3 }
 0x218   : > { %v748_v56 = vpop.f32.mrf.mxu2 }
 0x219   : > { %v2537_v57 = vadd.f32 %v813_v55, %v748_v56 }
 0x21b   : > { %v1252_v59 = vpop.f32.mrf.mxu1 }
 0x21d   : > { %v2545_v14 = vpop.f32.mrf.mxu0 }
 0x21e   : > { %v1061_v61 = vpop.f32.mrf.mxu3 }
 0x220   : > { %v969_v62 = vpop.f32.mrf.mxu2 }
 0x221   : > { %v993_v26 = vadd.f32 %v969_v62, %v900_v25 }
 0x223   : > { %v1085_v35 = vadd.f32 %v1061_v61, %v993_v26  ;;  %v1255_v37 = vpop.f32.mrf.mxu1  ;;  %v905_v26 = vadd.f32 %v2543_v34, %v2525_v38 }
 0x225   : > { %v2549_v18 = vpop.f32.mrf.mxu0 }
 0x226   : > { %v1064_v5 = vpop.f32.mrf.mxu3 }
 0x228   : > { %v972_v6 = vpop.f32.mrf.mxu2 }
 0x229   : > { %v994_v11 = vadd.f32 %v972_v6, %v901_v45 }
 0x22b   : > { %v1086_v42 = vadd.f32 %v1064_v5, %v994_v11 }
 0x22d   : > { %v1153_v21 = vpop.f32.mrf.mxu0 }
 0x22e   : > { %v1067_v7 = vpop.f32.mrf.mxu3  ;;  %v1177_v46 = vadd.f32 %v1153_v21, %v1085_v35 }
 0x230   : > { %v975_v8 = vpop.f32.mrf.mxu2  ;;  %v1270_v43 = vadd.f32 %v1246_v28, %v1177_v46 }
 0x231   : > { %v995_v53 = vadd.f32 %v975_v8, %v902_v23  ;;  %v904_v8 = vadd.f32 %v2541_v4, %v2513_v1  ;;  %v1258_v4 = vpop.f32.mrf.mxu1 }
 0x233   : > { %v1087_v55 = vadd.f32 %v1067_v7, %v995_v53  ;;  %v907_v53 = vadd.f32 %v2549_v18, %v2537_v57 }
 0x235   : > { %v1156_v30 = vpop.f32.mrf.mxu0 }
 0x236   : > { %v1070_v13 = vpop.f32.mrf.mxu3  ;;  %v1178_v52 = vadd.f32 %v1156_v30, %v1086_v42 }
 0x238   : > { %v978_v40 = vpop.f32.mrf.mxu2  ;;  %v1271_v56 = vadd.f32 %v1249_v39, %v1178_v52  ;;  %v906_v39 = vadd.f32 %v2545_v14, %v2531_v48 }
 0x239   : > { %v996_v63 = vadd.f32 %v978_v40, %v903_v32 }
 0x23b   : > { %v1088_v27 = vadd.f32 %v1070_v13, %v996_v63 }
 0x23d   : > { %v1159_v44 = vpop.f32.mrf.mxu0 }
 0x23e   : > { %v2547_v17 = vpop.f32.mrf.mxu3  ;;  %v1179_v62 = vadd.f32 %v1159_v44, %v1087_v55  ;;  %v1261_v44 = vpop.f32.mrf.mxu1 }
 0x240   : > { %v981_v51 = vpop.f32.mrf.mxu2  ;;  %v1272_v33 = vadd.f32 %v1252_v59, %v1179_v62 }
 0x241   : > { %v997_v10 = vadd.f32 %v981_v51, %v904_v8 }
 0x243   : > { %v1089_v21 = vadd.f32 %v2547_v17, %v997_v10 }
 0x245   : > { %v1162_v61 = vpop.f32.mrf.mxu0 }
 0x246   : > { %v2551_v20 = vpop.f32.mrf.mxu3  ;;  %v1180_v60 = vadd.f32 %v1162_v61, %v1088_v27 }
 0x248   : > { %v984_v3 = vpop.f32.mrf.mxu2  ;;  %v1273_v13 = vadd.f32 %v1255_v37, %v1180_v60 }
 0x249   : > { %v998_v30 = vadd.f32 %v984_v3, %v905_v26 }
 0x24b   : > { %v1090_v11 = vadd.f32 %v2551_v20, %v998_v30 }
 0x24d   : > { %v1165_v16 = vpop.f32.mrf.mxu0 }
 0x24e   : > { %v2553_v22 = vpop.f32.mrf.mxu3  ;;  %v1181_v28 = vadd.f32 %v1165_v16, %v1089_v21 }
 0x250   : > { %v2555_v24 = vpop.f32.mrf.mxu2  ;;  %v1274_v17 = vadd.f32 %v1258_v4, %v1181_v28 }
 0x251   : > { %v999_v38 = vadd.f32 %v2555_v24, %v906_v39  ;;  %v1264_v24 = vpop.f32.mrf.mxu1 }
 0x253   : > { %v1091_v23 = vadd.f32 %v2553_v22, %v999_v38 }
 0x255   : > { %v1168_v45 = vpop.f32.mrf.mxu0 }
 0x256   : > { %v2559_v31 = vpop.f32.mrf.mxu3 }
 0x258   : > { %v2561_v36 = vpop.f32.mrf.mxu2 }
 0x259   : > { %v1000_v14 = vadd.f32 %v2561_v36, %v907_v53  ;;  %v1267_v18 = vpop.f32.mrf.mxu1 }
 0x25d   : > { %v1171_v20 = vpop.f32.mrf.mxu0 }
 0x25e   : > { %v1430_v12 = vpop.f32.mrf.mxu3  ;;  %v1183_v48 = vadd.f32 %v1171_v20, %v1091_v23 }
 0x260   : > { %v1338_v47 = vpop.f32.mrf.mxu2 }
 0x261   : > { %v1362_v0 = vadd.f32 %v1338_v47, %v1270_v43  ;;  %v1182_v43 = vadd.f32 %v1168_v45, %v1090_v11 }
 0x263   : > { %v1454_v29 = vadd.f32 %v1430_v12, %v1362_v0  ;;  %v1275_v0 = vadd.f32 %v1261_v44, %v1182_v43 }
 0x265   : > { %v2573_v41 = vadd.f32 %v2570_v49, %v1454_v29  ;;  %v1174_v59 = vpop.f32.mrf.mxu0 }
 0x266   : > { %v1433_v54 = vpop.f32.mrf.mxu3 }
 0x267   : > { %1506 = vmatmul.f32.vlgmr.msrb.gmra.mxu0 %v2573_v41 }
 0x268   : > { %v1341_v58 = vpop.f32.mrf.mxu2 }
 0x269   : > { %v1363_v50 = vadd.f32 %v1341_v58, %v1271_v56  ;;  %v1092_v56 = vadd.f32 %v2559_v31, %v1000_v14  ;;  %v1276_v58 = vadd.f32 %v1264_v24, %v1183_v48 }
 0x26b   : > { %v1455_v2 = vadd.f32 %v1433_v54, %v1363_v50  ;;  %v1184_v61 = vadd.f32 %v1174_v59, %v1092_v56 }
 0x26d   : > { %v2579_v5 = vadd.f32 %v2570_v49, %v1455_v2  ;;  %v1277_v63 = vadd.f32 %v1267_v18, %v1184_v61 }
 0x26e   : > { %v1436_v6 = vpop.f32.mrf.mxu3 }
 0x26f   : > { %1509 = vmatmul.f32.gmra.mxu0 %v2579_v5 }
 0x270   : > { %v1344_v7 = vpop.f32.mrf.mxu2 }
 0x271   : > { %v1364_v9 = vadd.f32 %v1344_v7, %v1272_v33 }
 0x273   : > { %v1456_v15 = vadd.f32 %v1436_v6, %v1364_v9 }
 0x275   : > { %v2585_v40 = vadd.f32 %v2570_v49, %v1456_v15 }
 0x276   : > { %v1439_v19 = vpop.f32.mrf.mxu3 }
 0x277   : > { %1512 = vmatmul.f32.gmra.mxu0 %v2585_v40 }
 0x278   : > { %v1347_v25 = vpop.f32.mrf.mxu2 }
 0x279   : > { %v1365_v1 = vadd.f32 %v1347_v25, %v1273_v13 }
 0x27b   : > { %v1457_v51 = vadd.f32 %v1439_v19, %v1365_v1 }
 0x27d   : > { %v1469_v35 = vadd.f32 %v2570_v49, %v1457_v51 }
 0x27e   : > { %v1442_v46 = vpop.f32.mrf.mxu3 }
 0x27f   : > { %1515 = vmatmul.f32.gmra.mxu0 %v1469_v35 }
 0x280   : > { %v1350_v12 = vpop.f32.mrf.mxu2 }
 0x281   : > { %v1366_v42 = vadd.f32 %v1350_v12, %v1274_v17 }
 0x283   : > { %v1458_v34 = vadd.f32 %v1442_v46, %v1366_v42 }
 0x285   : > { %v1470_v3 = vadd.f32 %v2570_v49, %v1458_v34 }
 0x286   : > { %v1445_v47 = vpop.f32.mrf.mxu3 }
 0x287   : > { %1518 = vmatmul.f32.gmra.mxu0 %v1470_v3 }
 0x288   : > { %v1353_v52 = vpop.f32.mrf.mxu2 }
 0x289   : > { %v1367_v29 = vadd.f32 %v1353_v52, %v1275_v0  ;;  %v2640_v0 = vld [vmem:[%s2722_s6] ss:$0 sm:$0xff] }
 0x28b   : > { %v1459_v54 = vadd.f32 %v1445_v47, %v1367_v29  ;;  %v2647_v29 = vld [vmem:[%s2723_s7] ss:$0 sm:$0xff] }
 0x28d   : > { %v1471_v55 = vadd.f32 %v2570_v49, %v1459_v54 }
 0x28e   : > { %v1448_v32 = vpop.f32.mrf.mxu3 }
 0x28f   : > { %1521 = vmatmul.f32.gmra.mxu0 %v1471_v55 }
 0x290   : > { %v1356_v22 = vpop.f32.mrf.mxu2 }
 0x291   : > { %v1368_v50 = vadd.f32 %v1356_v22, %v1276_v58 }
 0x293   : > { %v1460_v62 = vadd.f32 %v1448_v32, %v1368_v50 }
 0x295   : > { %v1472_v57 = vadd.f32 %v2570_v49, %v1460_v62 }
 0x296   : > { %v1451_v6 = vpop.f32.mrf.mxu3 }
 0x297   : > { %1524 = vmatmul.f32.gmra.mxu0 %v1472_v57 }
 0x298   : > { %v1359_v36 = vpop.f32.mrf.mxu2 }
 0x299   : > { %v1369_v2 = vadd.f32 %v1359_v36, %v1277_v63 }
 0x29b   : > { %v1461_v27 = vadd.f32 %v1451_v6, %v1369_v2 }
 0x29d   : > { %v1473_v33 = vadd.f32 %v2570_v49, %v1461_v27 }
 0x29f   : > { %1527 = vmatmul.f32.gmra.mxu0 %v1473_v33 }
 0x2e4   : > { %v1507_v31 = vpop.f32.mrf.mxu0 }
 0x2e5   : > { %v1531_v7 = vsub.f32 %v2573_v41, %v1507_v31 }
 0x2e7   : > { %v1539_v8 = vmul.f32 %v1531_v7, %v1531_v7 }
 0x2e9   : > { %1563 = vmatmul.f32.vlgmr.msra.gmra.mxu1 %v1539_v8 }
 0x2ec   : > { %v1510_v9 = vpop.f32.mrf.mxu0 }
 0x2ed   : > { %v2607_v37 = vsub.f32 %v2579_v5, %v1510_v9 }
 0x2ef   : > { %v1540_v60 = vmul.f32 %v2607_v37, %v2607_v37 }
 0x2f1   : > { %1566 = vmatmul.f32.gmra.mxu1 %v1540_v60 }
 0x2f4   : > { %v1513_v10 = vpop.f32.mrf.mxu0 }
 0x2f5   : > { %v2612_v15 = vsub.f32 %v2585_v40, %v1513_v10 }
 0x2f7   : > { %v1541_v49 = vmul.f32 %v2612_v15, %v2612_v15 }
 0x2f9   : > { %1569 = vmatmul.f32.gmra.mxu1 %v1541_v49 }
 0x2fc   : > { %v1516_v16 = vpop.f32.mrf.mxu0 }
 0x2fd   : > { %v2616_v41 = vsub.f32 %v1469_v35, %v1516_v16 }
 0x2ff   : > { %v1542_v19 = vmul.f32 %v2616_v41, %v2616_v41 }
 0x301   : > { %1572 = vmatmul.f32.gmra.mxu1 %v1542_v19 }
 0x304   : > { %v1519_v5 = vpop.f32.mrf.mxu0 }
 0x305   : > { %v2620_v21 = vsub.f32 %v1470_v3, %v1519_v5 }
 0x307   : > { %v1543_v13 = vmul.f32 %v2620_v21, %v2620_v21 }
 0x309   : > { %1575 = vmatmul.f32.gmra.mxu1 %v1543_v13 }
 0x30c   : > { %v1522_v40 = vpop.f32.mrf.mxu0 }
 0x30d   : > { %v2624_v25 = vsub.f32 %v1471_v55, %v1522_v40 }
 0x30f   : > { %v1544_v26 = vmul.f32 %v2624_v25, %v2624_v25 }
 0x311   : > { %1578 = vmatmul.f32.gmra.mxu1 %v1544_v26 }
 0x314   : > { %v1525_v1 = vpop.f32.mrf.mxu0 }
 0x315   : > { %v2628_v4 = vsub.f32 %v1472_v57, %v1525_v1 }
 0x317   : > { %v1545_v28 = vmul.f32 %v2628_v4, %v2628_v4 }
 0x319   : > { %1581 = vmatmul.f32.gmra.mxu1 %v1545_v28 }
 0x31c   : > { %v1528_v30 = vpop.f32.mrf.mxu0 }
 0x31d   : > { %v2632_v51 = vsub.f32 %v1473_v33, %v1528_v30 }
 0x31f   : > { %v1546_v35 = vmul.f32 %v2632_v51, %v2632_v51 }
 0x321   : > { %1584 = vmatmul.f32.gmra.mxu1 %v1546_v35 }
 0x366   : > { %v1564_v45 = vpop.f32.mrf.mxu1 }
 0x367   : > { %v1565_v46 = vadd.f32 1e-05, %v1564_v45 }
 0x369   : > { %1982 = vrsqrt.f32 %v1565_v46  ;;  %vm1594_vm5 = vweird.f32 %v1565_v46 }
 0x36e   : > { %v1567_v11 = vpop.f32.mrf.mxu1 }
 0x36f   : > { %v1983_v17 = vpop.eup %1982  ;;  %v1568_v12 = vadd.f32 1e-05, %v1567_v11 }
 0x370   : > { %v1589_v39 = vmul.f32 %v1983_v17, %v1565_v46  ;;  %vm1595_vm4 = vweird.f32 %v1983_v17 }
 0x371   : > { %1984 = vrsqrt.f32 %v1568_v12  ;;  %vm1596_vm6 = vmor %vm1594_vm5, %vm1595_vm4  ;;  %vm1604_vm8 = vweird.f32 %v1568_v12 }
 0x372   : > { %v1590_v42 = vmul.f32 %v1983_v17, %v1589_v39 }
 0x374   : > { %v1591_v43 = vmul.f32 0.5, %v1590_v42 }
 0x376   : > { %v1592_v38 = vsub.f32 1.5, %v1591_v43  ;;  %v1570_v34 = vpop.f32.mrf.mxu1 }
 0x377   : > { %v1985_v44 = vpop.eup %1984  ;;  %v1571_v3 = vadd.f32 1e-05, %v1570_v34 }
 0x378   : > { %v1593_v47 = vmul.f32 %v1983_v17, %v1592_v38  ;;  %v1599_v23 = vmul.f32 %v1985_v44, %v1568_v12  ;;  %vm1605_vm7 = vweird.f32 %v1985_v44 }
 0x379   : > { %1986 = vrsqrt.f32 %v1571_v3  ;;  %vm1606_vm9 = vmor %vm1604_vm8, %vm1605_vm7  ;;  %vm1614_vm11 = vweird.f32 %v1571_v3 }
 0x37a   : > { %v1597_v20 = vsel %vm1596_vm6, %v1983_v17, %v1593_v47  ;;  %v1600_v52 = vmul.f32 %v1985_v44, %v1599_v23 }
 0x37b   : > { %v1668_v53 = vmul.f32 %v1597_v20, %v1531_v7 }
 0x37c   : > { %v1601_v48 = vmul.f32 0.5, %v1600_v52 }
 0x37d   : > { %v1680_v14 = vmul.f32 %v2640_v0, %v1668_v53 }
 0x37e   : > { %v1602_v54 = vsub.f32 1.5, %v1601_v48  ;;  %v1573_v24 = vpop.f32.mrf.mxu1 }
 0x37f   : > { %v1987_v55 = vpop.eup %1986  ;;  %v1692_v56 = vadd.f32 %v2647_v29, %v1680_v14  ;;  %v1574_v58 = vadd.f32 1e-05, %v1573_v24 }
 0x380   : > { %v1603_v22 = vmul.f32 %v1985_v44, %v1602_v54  ;;  %v1609_v32 = vmul.f32 %v1987_v55, %v1571_v3  ;;  %vm1615_vm10 = vweird.f32 %v1987_v55 }
 0x381   : > { %1700 = vst [vmem:[%s2651_s25] sm:$0xff] %v1692_v56  ;;  %1988 = vrsqrt.f32 %v1574_v58  ;;  %vm1616_vm12 = vmor %vm1614_vm11, %vm1615_vm10  ;;  %vm1624_vm14 = vweird.f32 %v1574_v58 }
 0x382   : > { %v1607_v50 = vsel %vm1606_vm9, %v1985_v44, %v1603_v22  ;;  %v1610_v59 = vmul.f32 %v1987_v55, %v1609_v32 }
 0x383   : > { %v1669_v61 = vmul.f32 %v1607_v50, %v2607_v37 }
 0x384   : > { %v1611_v62 = vmul.f32 0.5, %v1610_v59 }
 0x385   : > { %v1681_v57 = vmul.f32 %v2640_v0, %v1669_v61 }
 0x386   : > { %v1612_v18 = vsub.f32 1.5, %v1611_v62  ;;  %v1576_v63 = vpop.f32.mrf.mxu1 }
 0x387   : > { %v1989_v36 = vpop.eup %1988  ;;  %v1693_v2 = vadd.f32 %v2647_v29, %v1681_v57  ;;  %v1577_v6 = vadd.f32 1e-05, %v1576_v63 }
 0x388   : > { %v1613_v27 = vmul.f32 %v1987_v55, %v1612_v18  ;;  %v1619_v33 = vmul.f32 %v1989_v36, %v1574_v58  ;;  %vm1625_vm13 = vweird.f32 %v1989_v36 }
 0x389   : > { %1701 = vst [vmem:[%s2651_s25 + $0x8] sm:$0xff] %v1693_v2  ;;  %1990 = vrsqrt.f32 %v1577_v6  ;;  %vm1626_vm15 = vmor %vm1624_vm14, %vm1625_vm13  ;;  %vm1634_vm1 = vweird.f32 %v1577_v6 }
 0x38a   : > { %v1617_v31 = vsel %vm1616_vm12, %v1987_v55, %v1613_v27  ;;  %v1620_v7 = vmul.f32 %v1989_v36, %v1619_v33 }
 0x38b   : > { %v1670_v8 = vmul.f32 %v1617_v31, %v2612_v15 }
 0x38c   : > { %v1621_v9 = vmul.f32 0.5, %v1620_v7 }
 0x38d   : > { %v1682_v37 = vmul.f32 %v2640_v0, %v1670_v8 }
 0x38e   : > { %v1622_v60 = vsub.f32 1.5, %v1621_v9  ;;  %v1579_v10 = vpop.f32.mrf.mxu1 }
 0x38f   : > { %v1991_v49 = vpop.eup %1990  ;;  %v1694_v16 = vadd.f32 %v2647_v29, %v1682_v37  ;;  %v1580_v19 = vadd.f32 1e-05, %v1579_v10 }
 0x390   : > { %v1623_v5 = vmul.f32 %v1989_v36, %v1622_v60  ;;  %v1629_v13 = vmul.f32 %v1991_v49, %v1577_v6  ;;  %vm1635_vm0 = vweird.f32 %v1991_v49 }
 0x391   : > { %1702 = vst [vmem:[%s2651_s25 + $0x10] sm:$0xff] %v1694_v16  ;;  %1992 = vrsqrt.f32 %v1580_v19  ;;  %vm1636_vm2 = vmor %vm1634_vm1, %vm1635_vm0  ;;  %vm1644_vm4 = vweird.f32 %v1580_v19 }
 0x392   : > { %v1627_v40 = vsel %vm1626_vm15, %v1989_v36, %v1623_v5  ;;  %v1630_v26 = vmul.f32 %v1991_v49, %v1629_v13 }
 0x393   : > { %v1671_v15 = vmul.f32 %v1627_v40, %v2616_v41 }
 0x394   : > { %v1631_v1 = vmul.f32 0.5, %v1630_v26 }
 0x395   : > { %v1683_v28 = vmul.f32 %v2640_v0, %v1671_v15 }
 0x396   : > { %v1632_v30 = vsub.f32 1.5, %v1631_v1  ;;  %v1582_v35 = vpop.f32.mrf.mxu1 }
 0x397   : > { %v1993_v45 = vpop.eup %1992  ;;  %v1695_v46 = vadd.f32 %v2647_v29, %v1683_v28  ;;  %v1583_v11 = vadd.f32 1e-05, %v1582_v35 }
 0x398   : > { %v1633_v17 = vmul.f32 %v1991_v49, %v1632_v30  ;;  %v1639_v12 = vmul.f32 %v1993_v45, %v1580_v19  ;;  %vm1645_vm3 = vweird.f32 %v1993_v45 }
 0x399   : > { %1703 = vst [vmem:[%s2651_s25 + $0x18] sm:$0xff] %v1695_v46  ;;  %1994 = vrsqrt.f32 %v1583_v11  ;;  %vm1646_vm5 = vmor %vm1644_vm4, %vm1645_vm3  ;;  %vm1654_vm7 = vweird.f32 %v1583_v11 }
 0x39a   : > { %v1637_v39 = vsel %vm1636_vm2, %v1991_v49, %v1633_v17  ;;  %v1640_v42 = vmul.f32 %v1993_v45, %v1639_v12 }
 0x39b   : > { %v1672_v41 = vmul.f32 %v1637_v39, %v2620_v21 }
 0x39c   : > { %v1641_v43 = vmul.f32 0.5, %v1640_v42 }
 0x39d   : > { %v1684_v38 = vmul.f32 %v2640_v0, %v1672_v41 }
 0x39e   : > { %v1642_v34 = vsub.f32 1.5, %v1641_v43  ;;  %v1585_v44 = vpop.f32.mrf.mxu1 }
 0x39f   : > { %v1995_v3 = vpop.eup %1994  ;;  %v1696_v47 = vadd.f32 %v2647_v29, %v1684_v38  ;;  %v1586_v23 = vadd.f32 1e-05, %v1585_v44 }
 0x3a0   : > { %v1643_v20 = vmul.f32 %v1993_v45, %v1642_v34  ;;  %v1649_v52 = vmul.f32 %v1995_v3, %v1583_v11  ;;  %vm1655_vm6 = vweird.f32 %v1995_v3 }
 0x3a1   : > { %1704 = vst [vmem:[%s2651_s25 + $0x20] sm:$0xff] %v1696_v47  ;;  %1996 = vrsqrt.f32 %v1586_v23  ;;  %vm1656_vm8 = vmor %vm1654_vm7, %vm1655_vm6  ;;  %vm1664_vm10 = vweird.f32 %v1586_v23 }
 0x3a2   : > { %v1647_v53 = vsel %vm1646_vm5, %v1993_v45, %v1643_v20  ;;  %v1650_v48 = vmul.f32 %v1995_v3, %v1649_v52 }
 0x3a3   : > { %v1673_v21 = vmul.f32 %v1647_v53, %v2624_v25 }
 0x3a4   : > { %v1651_v14 = vmul.f32 0.5, %v1650_v48 }
 0x3a5   : > { %v1685_v54 = vmul.f32 %v2640_v0, %v1673_v21 }
 0x3a6   : > { %v1652_v24 = vsub.f32 1.5, %v1651_v14 }
 0x3a7   : > { %v1997_v55 = vpop.eup %1996  ;;  %v1697_v56 = vadd.f32 %v2647_v29, %v1685_v54 }
 0x3a8   : > { %v1653_v58 = vmul.f32 %v1995_v3, %v1652_v24  ;;  %v1659_v22 = vmul.f32 %v1997_v55, %v1586_v23  ;;  %vm1665_vm9 = vweird.f32 %v1997_v55 }
 0x3a9   : > { %1705 = vst [vmem:[%s2651_s25 + $0x28] sm:$0xff] %v1697_v56  ;;  %vm1666_vm11 = vmor %vm1664_vm10, %vm1665_vm9 }
 0x3aa   : > { %v1657_v32 = vsel %vm1656_vm8, %v1995_v3, %v1653_v58  ;;  %v1660_v50 = vmul.f32 %v1997_v55, %v1659_v22 }
 0x3ab   : > { %v1674_v25 = vmul.f32 %v1657_v32, %v2628_v4 }
 0x3ac   : > { %v1661_v59 = vmul.f32 0.5, %v1660_v50 }
 0x3ad   : > { %v1686_v61 = vmul.f32 %v2640_v0, %v1674_v25 }
 0x3ae   : > { %v1662_v62 = vsub.f32 1.5, %v1661_v59 }
 0x3af   : > { %v1698_v57 = vadd.f32 %v2647_v29, %v1686_v61 }
 0x3b0   : > { %v1663_v18 = vmul.f32 %v1997_v55, %v1662_v62 }
 0x3b1   : > { %1706 = vst [vmem:[%s2651_s25 + $0x30] sm:$0xff] %v1698_v57 }
 0x3b2   : > { %v1667_v4 = vsel %vm1666_vm11, %v1997_v55, %v1663_v18 }
 0x3b3   : > { %v1675_v63 = vmul.f32 %v1667_v4, %v2632_v51 }
 0x3b5   : > { %v1687_v36 = vmul.f32 %v2640_v0, %v1675_v63 }
 0x3b7   : > { %v1699_v2 = vadd.f32 %v2647_v29, %v1687_v36 }
 0x3b9   : > { %1707 = vst [vmem:[%s2651_s25 + $0x38] sm:$0xff] %v1699_v2 }
 0x3ba   : > { %2085 = shalt.err (!%p2082_p8)
}
 0x3bb   : > { %s2134_s19 = smov 128   ;;  %s2135_s25 = smov 8  }
 0x3bc   : > { %1923 = dma.vmem_to_hbm [thread:$0]  (%p2219_p5), %s1722_s18, 1024, %s1724_s9, %s1709_s20, %s2134_s19, %s2134_s19, %s2135_s25  }
 0x3bd PF: > { %p1940_p9 = scmp.ge.s32.totalorder %s2128_s30, 2  ;;  %s1738_s12 = sand.u32 1, %s2116_s27  }
 0x3be   : > { %s1739_s13 = scalar_lea.sflag [#allocation5], %s1738_s12 }
 0x3bf   : > { %p1933_p10 = pnand %p1940_p9, %p2223_p6 }
 0x3c1   : > { %p1934_p11 = pneg %p1933_p10 }
 0x3c3   : > { %2111 = dma.done.wait (%p1934_p11), %s1739_s13, 1024  }
 0x3c4   : > { %2113 = vsyncadd (%p1934_p11), %s1739_s13, 4294966272  ;;  %p20_p12 = scmp.ge.s32.totalorder %s2206_s11, 4   ;;  %s2728_s27 = smov %s2120_s28 }
 0x3c5   : > { %s2729_s28 = smov %s2124_s29  ;;  %s2730_s29 = smov %s2217_s14 }
 0x3c6   : > { %s2731_s30 = smov %s2206_s11  ;;  %22 = sbr.rel (!%p20_p12) target bundleno = 5 (0x5), region = 110 }
 0x3cb   :  { %1745 = vsyncpa [#allocation4], 1 }
 0x3cc   :  { %1747 = vsyncpa [#allocation4 + $0x1], 1 }
 0x3cd   :  { %1748 = vsyncpa [#allocation7], 1 }
 0x3ce   :  { %1749 = vsyncpa [#allocation5], 1 }
 0x3cf   :  { %1751 = vsyncpa [#allocation5 + $0x1], 1 }

</bundles_post_ra>
